<compile_context>
chip_gen: v7x
topology: tpu7x:2x2x1
jax: 0.10.0
libtpu: 0.0.40
codegen_flags: <defaults>
</compile_context>

<pallas_src>
import numpy as np
import jax
import jax.numpy as jnp
from jax.experimental import pallas as pl
from jax.experimental.pallas import tpu as pltpu

C = 3                      # in/out channels (fixed by the module)
KSIZE = 3
NTAPS = KSIZE * KSIZE      # 9 spatial taps
NW = C * NTAPS             # 27 weights per output channel


def _make_kernel(nb, chunk, shifts):
    """Kernel over one (3, nb, HW) channel-major block of images."""
    n_chunks = nb // chunk

    def kernel(w_ref, b_ref, mask_ref, x_ref, o_ref):
        # w_ref   : SMEM (3, 27)          f32   w_ref[co, ci*9 + t]
        # b_ref   : SMEM (3,)             f32
        # mask_ref: VMEM (9, chunk, HW)   f32   border-validity mask per tap
        # x_ref   : VMEM (3, nb, HW)      f32   channel-major input block
        # o_ref   : VMEM (3, nb, HW)      f32
        @pl.loop(0, n_chunks)
        def _(ic):
            off = pl.multiple_of(ic * chunk, chunk)
            sl = pl.ds(off, chunk)
            # Dense (chunk, HW) slabs: images on sublanes, pixels on lanes.
            xs = [x_ref[ci, sl, :] for ci in range(C)]
            # Residual + bias init (out = x + conv(x) + b).
            acc = [xs[co] + b_ref[co] for co in range(C)]
            for t in range(NTAPS):
                center = shifts[t] == 0          # (dy, dx) == (0, 0)
                m = None if center else mask_ref[t]
                for ci in range(C):
                    if center:
                        s = xs[ci]
                    else:
                        # rolled[p] = x[p + dy*W + dx]; the mask zeroes every
                        # position whose neighbour falls outside the image,
                        # reproducing conv2d's zero padding in-register.
                        s = pltpu.roll(xs[ci], shift=shifts[t], axis=1) * m
                    for co in range(C):
                        acc[co] = acc[co] + w_ref[co, ci * NTAPS + t] * s
            for co in range(C):
                o_ref[co, sl, :] = acc[co]       # dense lane/sublane store

    return kernel


def _pick_images_per_block(n_images, hw, requested):
    """Images per grid block.

    Must be a multiple of 8 (dense sublanes, (8,128) tiling rule) unless a
    single block covers the whole zero-padded batch.  Sized so the pipelined
    VMEM footprint (2x input + 2x output blocks, channel-major f32) stays
    <= ~12 MiB, while keeping >= ~8 grid steps when the batch allows.
    """
    if requested is not None:
        nb = max(1, min(int(requested), n_images))
    elif n_images <= 8:
        nb = n_images
    else:
        bytes_per_image = C * hw * 4                               # channel-major f32
        vmem_cap = max(8, ((12 << 20) // (4 * bytes_per_image)) // 8 * 8)
        steps_cap = max(8, (n_images // 8) // 8 * 8)               # >= ~8 grid steps
        nb = min(256, vmem_cap, steps_cap)
    if nb < n_images and nb % 8:
        nb = max(8, (nb // 8) * 8)
    return nb


def prompt_convolution(x, weight, bias, *, images_per_block=None):
    """out = x + conv2d(x, weight, bias, stride=1, padding=1)  (NCHW / OIHW)."""
    N, cx, H, W = x.shape
    assert cx == C and weight.shape == (C, C, KSIZE, KSIZE) and bias.shape == (C,)
    HW = H * W

    nb = _pick_images_per_block(N, HW, images_per_block)
    chunk = 8 if nb % 8 == 0 else nb
    n_pad = pl.cdiv(N, nb) * nb

    # ---- layout plumbing: channel-major (C, N_pad, HW), lane-dense pixels ----
    x_cm = jnp.transpose(x.astype(jnp.float32), (1, 0, 2, 3)).reshape(C, N, HW)
    if n_pad != N:
        x_cm = jnp.pad(x_cm, ((0, 0), (0, n_pad - N), (0, 0)))
    w2d = weight.reshape(C, NW).astype(jnp.float32)     # [co, ci*9 + ky*3 + kx]
    b1d = bias.astype(jnp.float32)

    # ---- host-precomputed roll shifts + combined border masks per tap ----
    h_idx = np.repeat(np.arange(H), W)
    w_idx = np.tile(np.arange(W), H)
    masks = np.empty((NTAPS, HW), np.float32)
    shifts = []
    for ky in range(KSIZE):
        for kx in range(KSIZE):
            dy, dx = ky - 1, kx - 1
            t = ky * KSIZE + kx
            masks[t] = ((h_idx + dy >= 0) & (h_idx + dy < H) &
                        (w_idx + dx >= 0) & (w_idx + dx < W)).astype(np.float32)
            shifts.append((-(dy * W + dx)) % HW)        # rolled[p] = x[p+dy*W+dx]
    # Pre-broadcast the masks to the chunk height so the kernel never emits
    # per-use sublane broadcasts.
    masks_b = jnp.asarray(
        np.broadcast_to(masks[:, None, :], (NTAPS, chunk, HW)).copy())

    # ---- VMEM budget: in + out blocks double-buffered, masks stay resident ----
    block_bytes = 4 * (C * nb * HW * 4) + NTAPS * chunk * HW * 4
    vmem_limit = int(min(32 << 20, max(8 << 20, block_bytes + (4 << 20))))

    out_cm = pl.pallas_call(
        _make_kernel(nb, chunk, shifts),
        out_shape=jax.ShapeDtypeStruct((C, n_pad, HW), jnp.float32),
        grid=(n_pad // nb,),
        in_specs=[
            pl.BlockSpec(memory_space=pltpu.MemorySpace.SMEM),        # weights (3,27)
            pl.BlockSpec(memory_space=pltpu.MemorySpace.SMEM),        # bias (3,)
            pl.BlockSpec((NTAPS, chunk, HW), lambda n: (0, 0, 0)),    # masks (resident)
            pl.BlockSpec((C, nb, HW), lambda n: (0, n, 0)),           # x (channel-major)
        ],
        out_specs=pl.BlockSpec((C, nb, HW), lambda n: (0, n, 0)),
        compiler_params=pltpu.CompilerParams(
            dimension_semantics=("parallel",),
            vmem_limit_bytes=vmem_limit),
    )(w2d, b1d, masks_b, x_cm)

    out = out_cm[:, :N, :].reshape(C, N, H, W)
    return jnp.transpose(out, (1, 0, 2, 3))


def _reference(x, weight, bias):
    conv = jax.lax.conv_general_dilated(
        x, weight, window_strides=(1, 1), padding=((1, 1), (1, 1)),
        dimension_numbers=("NCHW", "OIHW", "NCHW"))
    return x + conv + bias[None, :, None, None]


if __name__ == "__main__":
    key = jax.random.PRNGKey(0)
    k_x, k_w, k_b, k_x2 = jax.random.split(key, 4)

    N, H, W = 2, 16, 16
    x = jax.random.normal(k_x, (N, C, H, W), dtype=jnp.float32)

    # Xavier-uniform weights as in SimpleConvolution.__init__; nonzero bias so
    # the +bias path is exercised by the self-test.
    fan = C * KSIZE * KSIZE
    bound = float(np.sqrt(6.0 / (fan + fan)))
    weight = jax.random.uniform(k_w, (C, C, KSIZE, KSIZE), dtype=jnp.float32,
                                minval=-bound, maxval=bound)
    bias = 0.1 * jax.random.normal(k_b, (C,), dtype=jnp.float32)

    out = jax.block_until_ready(prompt_convolution(x, weight, bias))
    ref = jax.block_until_ready(_reference(x, weight, bias))
    np.testing.assert_allclose(np.asarray(out), np.asarray(ref),
                               rtol=1e-5, atol=1e-5)

    # Second config: exercises the multi-step grid, batch zero-padding
    # (N=20 -> N_pad=24, 3 grid steps of 8 images) and the chunked image loop.
    N2 = 20
    x2 = jax.random.normal(k_x2, (N2, C, H, W), dtype=jnp.float32)
    out2 = jax.block_until_ready(prompt_convolution(x2, weight, bias))
    ref2 = jax.block_until_ready(_reference(x2, weight, bias))
    np.testing.assert_allclose(np.asarray(out2), np.asarray(ref2),
                               rtol=1e-5, atol=1e-5)

    print("KERNEL_OK")
</pallas_src>

<mosaic_0001>
module attributes {stable_mosaic.version = 11 : i64} {
  func.func @kernel(%arg0: i32, %arg1: memref<3x27xf32, #tpu.memory_space<smem>>, %arg2: memref<3xf32, #tpu.memory_space<smem>>, %arg3: memref<9x2x256xf32, #tpu.memory_space<vmem>>, %arg4: memref<3x2x256xf32, #tpu.memory_space<vmem>>, %arg5: memref<3x2x256xf32, #tpu.memory_space<vmem>>) attributes {dimension_semantics = [#tpu.dimension_semantics<parallel>], iteration_bounds = array<i64: 1>, scalar_prefetch = 0 : i64, scratch_operands = 0 : i64, tpu.core_type = #tpu.core_type<tc>, window_params = [{transform_indices = @transform_0, window_bounds = array<i64: 3, 27>}, {transform_indices = @transform_1, window_bounds = array<i64: 3>}, {pipeline_mode = #tpu.pipeline_mode<synchronous>, transform_indices = @transform_2, window_bounds = array<i64: 9, 2, 256>}, {transform_indices = @transform_3, window_bounds = array<i64: 3, 2, 256>}, {transform_indices = @transform_4, window_bounds = array<i64: 3, 2, 256>}]} {
    %c0_i32 = arith.constant 0 : i32
    %c1_i32 = arith.constant 1 : i32
    %0 = arith.muli %c0_i32, %c1_i32 : i32
    %c0_i32_0 = arith.constant 0 : i32
    %1 = arith.addi %c0_i32_0, %0 : i32
    %c2_i32 = arith.constant 2 : i32
    %2 = arith.muli %1, %c2_i32 : i32
    %3 = tpu.assume_multiple %2, 2 : i32
    %c0 = arith.constant 0 : index
    %4 = arith.index_cast %3 : i32 to index
    %c0_1 = arith.constant 0 : index
    %5 = vector.load %arg4[%c0, %4, %c0_1] : memref<3x2x256xf32, #tpu.memory_space<vmem>>, vector<1x2x256xf32>
    %6 = vector.shape_cast %5 : vector<1x2x256xf32> to vector<2x256xf32>
    %c1 = arith.constant 1 : index
    %7 = arith.index_cast %3 : i32 to index
    %c0_2 = arith.constant 0 : index
    %8 = vector.load %arg4[%c1, %7, %c0_2] : memref<3x2x256xf32, #tpu.memory_space<vmem>>, vector<1x2x256xf32>
    %9 = vector.shape_cast %8 : vector<1x2x256xf32> to vector<2x256xf32>
    %c2 = arith.constant 2 : index
    %10 = arith.index_cast %3 : i32 to index
    %c0_3 = arith.constant 0 : index
    %11 = vector.load %arg4[%c2, %10, %c0_3] : memref<3x2x256xf32, #tpu.memory_space<vmem>>, vector<1x2x256xf32>
    %12 = vector.shape_cast %11 : vector<1x2x256xf32> to vector<2x256xf32>
    %c0_4 = arith.constant 0 : index
    %13 = memref.load %arg2[%c0_4] : memref<3xf32, #tpu.memory_space<smem>>
    %14 = vector.broadcast %13 : f32 to vector<2x256xf32>
    %15 = arith.addf %6, %14 : vector<2x256xf32>
    %c1_5 = arith.constant 1 : index
    %16 = memref.load %arg2[%c1_5] : memref<3xf32, #tpu.memory_space<smem>>
    %17 = vector.broadcast %16 : f32 to vector<2x256xf32>
    %18 = arith.addf %9, %17 : vector<2x256xf32>
    %c2_6 = arith.constant 2 : index
    %19 = memref.load %arg2[%c2_6] : memref<3xf32, #tpu.memory_space<smem>>
    %20 = vector.broadcast %19 : f32 to vector<2x256xf32>
    %21 = arith.addf %12, %20 : vector<2x256xf32>
    %c0_7 = arith.constant 0 : index
    %c0_8 = arith.constant 0 : index
    %c0_9 = arith.constant 0 : index
    %22 = vector.load %arg3[%c0_7, %c0_8, %c0_9] : memref<9x2x256xf32, #tpu.memory_space<vmem>>, vector<1x2x256xf32>
    %23 = vector.shape_cast %22 : vector<1x2x256xf32> to vector<2x256xf32>
    %c17_i32 = arith.constant 17 : i32
    %24 = tpu.dynamic_rotate %6 by %c17_i32 dim 1 : vector<2x256xf32>, i32 -> vector<2x256xf32>
    %25 = arith.mulf %24, %23 : vector<2x256xf32>
    %c0_10 = arith.constant 0 : index
    %c0_11 = arith.constant 0 : index
    %26 = memref.load %arg1[%c0_10, %c0_11] : memref<3x27xf32, #tpu.memory_space<smem>>
    %27 = vector.broadcast %26 : f32 to vector<2x256xf32>
    %28 = arith.mulf %27, %25 : vector<2x256xf32>
    %29 = arith.addf %15, %28 : vector<2x256xf32>
    %c1_12 = arith.constant 1 : index
    %c0_13 = arith.constant 0 : index
    %30 = memref.load %arg1[%c1_12, %c0_13] : memref<3x27xf32, #tpu.memory_space<smem>>
    %31 = vector.broadcast %30 : f32 to vector<2x256xf32>
    %32 = arith.mulf %31, %25 : vector<2x256xf32>
    %33 = arith.addf %18, %32 : vector<2x256xf32>
    %c2_14 = arith.constant 2 : index
    %c0_15 = arith.constant 0 : index
    %34 = memref.load %arg1[%c2_14, %c0_15] : memref<3x27xf32, #tpu.memory_space<smem>>
    %35 = vector.broadcast %34 : f32 to vector<2x256xf32>
    %36 = arith.mulf %35, %25 : vector<2x256xf32>
    %37 = arith.addf %21, %36 : vector<2x256xf32>
    %c17_i32_16 = arith.constant 17 : i32
    %38 = tpu.dynamic_rotate %9 by %c17_i32_16 dim 1 : vector<2x256xf32>, i32 -> vector<2x256xf32>
    %39 = arith.mulf %38, %23 : vector<2x256xf32>
    %c0_17 = arith.constant 0 : index
    %c9 = arith.constant 9 : index
    %40 = memref.load %arg1[%c0_17, %c9] : memref<3x27xf32, #tpu.memory_space<smem>>
    %41 = vector.broadcast %40 : f32 to vector<2x256xf32>
    %42 = arith.mulf %41, %39 : vector<2x256xf32>
    %43 = arith.addf %29, %42 : vector<2x256xf32>
    %c1_18 = arith.constant 1 : index
    %c9_19 = arith.constant 9 : index
    %44 = memref.load %arg1[%c1_18, %c9_19] : memref<3x27xf32, #tpu.memory_space<smem>>
    %45 = vector.broadcast %44 : f32 to vector<2x256xf32>
    %46 = arith.mulf %45, %39 : vector<2x256xf32>
    %47 = arith.addf %33, %46 : vector<2x256xf32>
    %c2_20 = arith.constant 2 : index
    %c9_21 = arith.constant 9 : index
    %48 = memref.load %arg1[%c2_20, %c9_21] : memref<3x27xf32, #tpu.memory_space<smem>>
    %49 = vector.broadcast %48 : f32 to vector<2x256xf32>
    %50 = arith.mulf %49, %39 : vector<2x256xf32>
    %51 = arith.addf %37, %50 : vector<2x256xf32>
    %c17_i32_22 = arith.constant 17 : i32
    %52 = tpu.dynamic_rotate %12 by %c17_i32_22 dim 1 : vector<2x256xf32>, i32 -> vector<2x256xf32>
    %53 = arith.mulf %52, %23 : vector<2x256xf32>
    %c0_23 = arith.constant 0 : index
    %c18 = arith.constant 18 : index
    %54 = memref.load %arg1[%c0_23, %c18] : memref<3x27xf32, #tpu.memory_space<smem>>
    %55 = vector.broadcast %54 : f32 to vector<2x256xf32>
    %56 = arith.mulf %55, %53 : vector<2x256xf32>
    %57 = arith.addf %43, %56 : vector<2x256xf32>
    %c1_24 = arith.constant 1 : index
    %c18_25 = arith.constant 18 : index
    %58 = memref.load %arg1[%c1_24, %c18_25] : memref<3x27xf32, #tpu.memory_space<smem>>
    %59 = vector.broadcast %58 : f32 to vector<2x256xf32>
    %60 = arith.mulf %59, %53 : vector<2x256xf32>
    %61 = arith.addf %47, %60 : vector<2x256xf32>
    %c2_26 = arith.constant 2 : index
    %c18_27 = arith.constant 18 : index
    %62 = memref.load %arg1[%c2_26, %c18_27] : memref<3x27xf32, #tpu.memory_space<smem>>
    %63 = vector.broadcast %62 : f32 to vector<2x256xf32>
    %64 = arith.mulf %63, %53 : vector<2x256xf32>
    %65 = arith.addf %51, %64 : vector<2x256xf32>
    %c1_28 = arith.constant 1 : index
    %c0_29 = arith.constant 0 : index
    %c0_30 = arith.constant 0 : index
    %66 = vector.load %arg3[%c1_28, %c0_29, %c0_30] : memref<9x2x256xf32, #tpu.memory_space<vmem>>, vector<1x2x256xf32>
    %67 = vector.shape_cast %66 : vector<1x2x256xf32> to vector<2x256xf32>
    %c16_i32 = arith.constant 16 : i32
    %68 = tpu.dynamic_rotate %6 by %c16_i32 dim 1 : vector<2x256xf32>, i32 -> vector<2x256xf32>
    %69 = arith.mulf %68, %67 : vector<2x256xf32>
    %c0_31 = arith.constant 0 : index
    %c1_32 = arith.constant 1 : index
    %70 = memref.load %arg1[%c0_31, %c1_32] : memref<3x27xf32, #tpu.memory_space<smem>>
    %71 = vector.broadcast %70 : f32 to vector<2x256xf32>
    %72 = arith.mulf %71, %69 : vector<2x256xf32>
    %73 = arith.addf %57, %72 : vector<2x256xf32>
    %c1_33 = arith.constant 1 : index
    %c1_34 = arith.constant 1 : index
    %74 = memref.load %arg1[%c1_33, %c1_34] : memref<3x27xf32, #tpu.memory_space<smem>>
    %75 = vector.broadcast %74 : f32 to vector<2x256xf32>
    %76 = arith.mulf %75, %69 : vector<2x256xf32>
    %77 = arith.addf %61, %76 : vector<2x256xf32>
    %c2_35 = arith.constant 2 : index
    %c1_36 = arith.constant 1 : index
    %78 = memref.load %arg1[%c2_35, %c1_36] : memref<3x27xf32, #tpu.memory_space<smem>>
    %79 = vector.broadcast %78 : f32 to vector<2x256xf32>
    %80 = arith.mulf %79, %69 : vector<2x256xf32>
    %81 = arith.addf %65, %80 : vector<2x256xf32>
    %c16_i32_37 = arith.constant 16 : i32
    %82 = tpu.dynamic_rotate %9 by %c16_i32_37 dim 1 : vector<2x256xf32>, i32 -> vector<2x256xf32>
    %83 = arith.mulf %82, %67 : vector<2x256xf32>
    %c0_38 = arith.constant 0 : index
    %c10 = arith.constant 10 : index
    %84 = memref.load %arg1[%c0_38, %c10] : memref<3x27xf32, #tpu.memory_space<smem>>
    %85 = vector.broadcast %84 : f32 to vector<2x256xf32>
    %86 = arith.mulf %85, %83 : vector<2x256xf32>
    %87 = arith.addf %73, %86 : vector<2x256xf32>
    %c1_39 = arith.constant 1 : index
    %c10_40 = arith.constant 10 : index
    %88 = memref.load %arg1[%c1_39, %c10_40] : memref<3x27xf32, #tpu.memory_space<smem>>
    %89 = vector.broadcast %88 : f32 to vector<2x256xf32>
    %90 = arith.mulf %89, %83 : vector<2x256xf32>
    %91 = arith.addf %77, %90 : vector<2x256xf32>
    %c2_41 = arith.constant 2 : index
    %c10_42 = arith.constant 10 : index
    %92 = memref.load %arg1[%c2_41, %c10_42] : memref<3x27xf32, #tpu.memory_space<smem>>
    %93 = vector.broadcast %92 : f32 to vector<2x256xf32>
    %94 = arith.mulf %93, %83 : vector<2x256xf32>
    %95 = arith.addf %81, %94 : vector<2x256xf32>
    %c16_i32_43 = arith.constant 16 : i32
    %96 = tpu.dynamic_rotate %12 by %c16_i32_43 dim 1 : vector<2x256xf32>, i32 -> vector<2x256xf32>
    %97 = arith.mulf %96, %67 : vector<2x256xf32>
    %c0_44 = arith.constant 0 : index
    %c19 = arith.constant 19 : index
    %98 = memref.load %arg1[%c0_44, %c19] : memref<3x27xf32, #tpu.memory_space<smem>>
    %99 = vector.broadcast %98 : f32 to vector<2x256xf32>
    %100 = arith.mulf %99, %97 : vector<2x256xf32>
    %101 = arith.addf %87, %100 : vector<2x256xf32>
    %c1_45 = arith.constant 1 : index
    %c19_46 = arith.constant 19 : index
    %102 = memref.load %arg1[%c1_45, %c19_46] : memref<3x27xf32, #tpu.memory_space<smem>>
    %103 = vector.broadcast %102 : f32 to vector<2x256xf32>
    %104 = arith.mulf %103, %97 : vector<2x256xf32>
    %105 = arith.addf %91, %104 : vector<2x256xf32>
    %c2_47 = arith.constant 2 : index
    %c19_48 = arith.constant 19 : index
    %106 = memref.load %arg1[%c2_47, %c19_48] : memref<3x27xf32, #tpu.memory_space<smem>>
    %107 = vector.broadcast %106 : f32 to vector<2x256xf32>
    %108 = arith.mulf %107, %97 : vector<2x256xf32>
    %109 = arith.addf %95, %108 : vector<2x256xf32>
    %c2_49 = arith.constant 2 : index
    %c0_50 = arith.constant 0 : index
    %c0_51 = arith.constant 0 : index
    %110 = vector.load %arg3[%c2_49, %c0_50, %c0_51] : memref<9x2x256xf32, #tpu.memory_space<vmem>>, vector<1x2x256xf32>
    %111 = vector.shape_cast %110 : vector<1x2x256xf32> to vector<2x256xf32>
    %c15_i32 = arith.constant 15 : i32
    %112 = tpu.dynamic_rotate %6 by %c15_i32 dim 1 : vector<2x256xf32>, i32 -> vector<2x256xf32>
    %113 = arith.mulf %112, %111 : vector<2x256xf32>
    %c0_52 = arith.constant 0 : index
    %c2_53 = arith.constant 2 : index
    %114 = memref.load %arg1[%c0_52, %c2_53] : memref<3x27xf32, #tpu.memory_space<smem>>
    %115 = vector.broadcast %114 : f32 to vector<2x256xf32>
    %116 = arith.mulf %115, %113 : vector<2x256xf32>
    %117 = arith.addf %101, %116 : vector<2x256xf32>
    %c1_54 = arith.constant 1 : index
    %c2_55 = arith.constant 2 : index
    %118 = memref.load %arg1[%c1_54, %c2_55] : memref<3x27xf32, #tpu.memory_space<smem>>
    %119 = vector.broadcast %118 : f32 to vector<2x256xf32>
    %120 = arith.mulf %119, %113 : vector<2x256xf32>
    %121 = arith.addf %105, %120 : vector<2x256xf32>
    %c2_56 = arith.constant 2 : index
    %c2_57 = arith.constant 2 : index
    %122 = memref.load %arg1[%c2_56, %c2_57] : memref<3x27xf32, #tpu.memory_space<smem>>
    %123 = vector.broadcast %122 : f32 to vector<2x256xf32>
    %124 = arith.mulf %123, %113 : vector<2x256xf32>
    %125 = arith.addf %109, %124 : vector<2x256xf32>
    %c15_i32_58 = arith.constant 15 : i32
    %126 = tpu.dynamic_rotate %9 by %c15_i32_58 dim 1 : vector<2x256xf32>, i32 -> vector<2x256xf32>
    %127 = arith.mulf %126, %111 : vector<2x256xf32>
    %c0_59 = arith.constant 0 : index
    %c11 = arith.constant 11 : index
    %128 = memref.load %arg1[%c0_59, %c11] : memref<3x27xf32, #tpu.memory_space<smem>>
    %129 = vector.broadcast %128 : f32 to vector<2x256xf32>
    %130 = arith.mulf %129, %127 : vector<2x256xf32>
    %131 = arith.addf %117, %130 : vector<2x256xf32>
    %c1_60 = arith.constant 1 : index
    %c11_61 = arith.constant 11 : index
    %132 = memref.load %arg1[%c1_60, %c11_61] : memref<3x27xf32, #tpu.memory_space<smem>>
    %133 = vector.broadcast %132 : f32 to vector<2x256xf32>
    %134 = arith.mulf %133, %127 : vector<2x256xf32>
    %135 = arith.addf %121, %134 : vector<2x256xf32>
    %c2_62 = arith.constant 2 : index
    %c11_63 = arith.constant 11 : index
    %136 = memref.load %arg1[%c2_62, %c11_63] : memref<3x27xf32, #tpu.memory_space<smem>>
    %137 = vector.broadcast %136 : f32 to vector<2x256xf32>
    %138 = arith.mulf %137, %127 : vector<2x256xf32>
    %139 = arith.addf %125, %138 : vector<2x256xf32>
    %c15_i32_64 = arith.constant 15 : i32
    %140 = tpu.dynamic_rotate %12 by %c15_i32_64 dim 1 : vector<2x256xf32>, i32 -> vector<2x256xf32>
    %141 = arith.mulf %140, %111 : vector<2x256xf32>
    %c0_65 = arith.constant 0 : index
    %c20 = arith.constant 20 : index
    %142 = memref.load %arg1[%c0_65, %c20] : memref<3x27xf32, #tpu.memory_space<smem>>
    %143 = vector.broadcast %142 : f32 to vector<2x256xf32>
    %144 = arith.mulf %143, %141 : vector<2x256xf32>
    %145 = arith.addf %131, %144 : vector<2x256xf32>
    %c1_66 = arith.constant 1 : index
    %c20_67 = arith.constant 20 : index
    %146 = memref.load %arg1[%c1_66, %c20_67] : memref<3x27xf32, #tpu.memory_space<smem>>
    %147 = vector.broadcast %146 : f32 to vector<2x256xf32>
    %148 = arith.mulf %147, %141 : vector<2x256xf32>
    %149 = arith.addf %135, %148 : vector<2x256xf32>
    %c2_68 = arith.constant 2 : index
    %c20_69 = arith.constant 20 : index
    %150 = memref.load %arg1[%c2_68, %c20_69] : memref<3x27xf32, #tpu.memory_space<smem>>
    %151 = vector.broadcast %150 : f32 to vector<2x256xf32>
    %152 = arith.mulf %151, %141 : vector<2x256xf32>
    %153 = arith.addf %139, %152 : vector<2x256xf32>
    %c3 = arith.constant 3 : index
    %c0_70 = arith.constant 0 : index
    %c0_71 = arith.constant 0 : index
    %154 = vector.load %arg3[%c3, %c0_70, %c0_71] : memref<9x2x256xf32, #tpu.memory_space<vmem>>, vector<1x2x256xf32>
    %155 = vector.shape_cast %154 : vector<1x2x256xf32> to vector<2x256xf32>
    %c1_i32_72 = arith.constant 1 : i32
    %156 = tpu.dynamic_rotate %6 by %c1_i32_72 dim 1 : vector<2x256xf32>, i32 -> vector<2x256xf32>
    %157 = arith.mulf %156, %155 : vector<2x256xf32>
    %c0_73 = arith.constant 0 : index
    %c3_74 = arith.constant 3 : index
    %158 = memref.load %arg1[%c0_73, %c3_74] : memref<3x27xf32, #tpu.memory_space<smem>>
    %159 = vector.broadcast %158 : f32 to vector<2x256xf32>
    %160 = arith.mulf %159, %157 : vector<2x256xf32>
    %161 = arith.addf %145, %160 : vector<2x256xf32>
    %c1_75 = arith.constant 1 : index
    %c3_76 = arith.constant 3 : index
    %162 = memref.load %arg1[%c1_75, %c3_76] : memref<3x27xf32, #tpu.memory_space<smem>>
    %163 = vector.broadcast %162 : f32 to vector<2x256xf32>
    %164 = arith.mulf %163, %157 : vector<2x256xf32>
    %165 = arith.addf %149, %164 : vector<2x256xf32>
    %c2_77 = arith.constant 2 : index
    %c3_78 = arith.constant 3 : index
    %166 = memref.load %arg1[%c2_77, %c3_78] : memref<3x27xf32, #tpu.memory_space<smem>>
    %167 = vector.broadcast %166 : f32 to vector<2x256xf32>
    %168 = arith.mulf %167, %157 : vector<2x256xf32>
    %169 = arith.addf %153, %168 : vector<2x256xf32>
    %c1_i32_79 = arith.constant 1 : i32
    %170 = tpu.dynamic_rotate %9 by %c1_i32_79 dim 1 : vector<2x256xf32>, i32 -> vector<2x256xf32>
    %171 = arith.mulf %170, %155 : vector<2x256xf32>
    %c0_80 = arith.constant 0 : index
    %c12 = arith.constant 12 : index
    %172 = memref.load %arg1[%c0_80, %c12] : memref<3x27xf32, #tpu.memory_space<smem>>
    %173 = vector.broadcast %172 : f32 to vector<2x256xf32>
    %174 = arith.mulf %173, %171 : vector<2x256xf32>
    %175 = arith.addf %161, %174 : vector<2x256xf32>
    %c1_81 = arith.constant 1 : index
    %c12_82 = arith.constant 12 : index
    %176 = memref.load %arg1[%c1_81, %c12_82] : memref<3x27xf32, #tpu.memory_space<smem>>
    %177 = vector.broadcast %176 : f32 to vector<2x256xf32>
    %178 = arith.mulf %177, %171 : vector<2x256xf32>
    %179 = arith.addf %165, %178 : vector<2x256xf32>
    %c2_83 = arith.constant 2 : index
    %c12_84 = arith.constant 12 : index
    %180 = memref.load %arg1[%c2_83, %c12_84] : memref<3x27xf32, #tpu.memory_space<smem>>
    %181 = vector.broadcast %180 : f32 to vector<2x256xf32>
    %182 = arith.mulf %181, %171 : vector<2x256xf32>
    %183 = arith.addf %169, %182 : vector<2x256xf32>
    %c1_i32_85 = arith.constant 1 : i32
    %184 = tpu.dynamic_rotate %12 by %c1_i32_85 dim 1 : vector<2x256xf32>, i32 -> vector<2x256xf32>
    %185 = arith.mulf %184, %155 : vector<2x256xf32>
    %c0_86 = arith.constant 0 : index
    %c21 = arith.constant 21 : index
    %186 = memref.load %arg1[%c0_86, %c21] : memref<3x27xf32, #tpu.memory_space<smem>>
    %187 = vector.broadcast %186 : f32 to vector<2x256xf32>
    %188 = arith.mulf %187, %185 : vector<2x256xf32>
    %189 = arith.addf %175, %188 : vector<2x256xf32>
    %c1_87 = arith.constant 1 : index
    %c21_88 = arith.constant 21 : index
    %190 = memref.load %arg1[%c1_87, %c21_88] : memref<3x27xf32, #tpu.memory_space<smem>>
    %191 = vector.broadcast %190 : f32 to vector<2x256xf32>
    %192 = arith.mulf %191, %185 : vector<2x256xf32>
    %193 = arith.addf %179, %192 : vector<2x256xf32>
    %c2_89 = arith.constant 2 : index
    %c21_90 = arith.constant 21 : index
    %194 = memref.load %arg1[%c2_89, %c21_90] : memref<3x27xf32, #tpu.memory_space<smem>>
    %195 = vector.broadcast %194 : f32 to vector<2x256xf32>
    %196 = arith.mulf %195, %185 : vector<2x256xf32>
    %197 = arith.addf %183, %196 : vector<2x256xf32>
    %c0_91 = arith.constant 0 : index
    %c4 = arith.constant 4 : index
    %198 = memref.load %arg1[%c0_91, %c4] : memref<3x27xf32, #tpu.memory_space<smem>>
    %199 = vector.broadcast %198 : f32 to vector<2x256xf32>
    %200 = arith.mulf %199, %6 : vector<2x256xf32>
    %201 = arith.addf %189, %200 : vector<2x256xf32>
    %c1_92 = arith.constant 1 : index
    %c4_93 = arith.constant 4 : index
    %202 = memref.load %arg1[%c1_92, %c4_93] : memref<3x27xf32, #tpu.memory_space<smem>>
    %203 = vector.broadcast %202 : f32 to vector<2x256xf32>
    %204 = arith.mulf %203, %6 : vector<2x256xf32>
    %205 = arith.addf %193, %204 : vector<2x256xf32>
    %c2_94 = arith.constant 2 : index
    %c4_95 = arith.constant 4 : index
    %206 = memref.load %arg1[%c2_94, %c4_95] : memref<3x27xf32, #tpu.memory_space<smem>>
    %207 = vector.broadcast %206 : f32 to vector<2x256xf32>
    %208 = arith.mulf %207, %6 : vector<2x256xf32>
    %209 = arith.addf %197, %208 : vector<2x256xf32>
    %c0_96 = arith.constant 0 : index
    %c13 = arith.constant 13 : index
    %210 = memref.load %arg1[%c0_96, %c13] : memref<3x27xf32, #tpu.memory_space<smem>>
    %211 = vector.broadcast %210 : f32 to vector<2x256xf32>
    %212 = arith.mulf %211, %9 : vector<2x256xf32>
    %213 = arith.addf %201, %212 : vector<2x256xf32>
    %c1_97 = arith.constant 1 : index
    %c13_98 = arith.constant 13 : index
    %214 = memref.load %arg1[%c1_97, %c13_98] : memref<3x27xf32, #tpu.memory_space<smem>>
    %215 = vector.broadcast %214 : f32 to vector<2x256xf32>
    %216 = arith.mulf %215, %9 : vector<2x256xf32>
    %217 = arith.addf %205, %216 : vector<2x256xf32>
    %c2_99 = arith.constant 2 : index
    %c13_100 = arith.constant 13 : index
    %218 = memref.load %arg1[%c2_99, %c13_100] : memref<3x27xf32, #tpu.memory_space<smem>>
    %219 = vector.broadcast %218 : f32 to vector<2x256xf32>
    %220 = arith.mulf %219, %9 : vector<2x256xf32>
    %221 = arith.addf %209, %220 : vector<2x256xf32>
    %c0_101 = arith.constant 0 : index
    %c22 = arith.constant 22 : index
    %222 = memref.load %arg1[%c0_101, %c22] : memref<3x27xf32, #tpu.memory_space<smem>>
    %223 = vector.broadcast %222 : f32 to vector<2x256xf32>
    %224 = arith.mulf %223, %12 : vector<2x256xf32>
    %225 = arith.addf %213, %224 : vector<2x256xf32>
    %c1_102 = arith.constant 1 : index
    %c22_103 = arith.constant 22 : index
    %226 = memref.load %arg1[%c1_102, %c22_103] : memref<3x27xf32, #tpu.memory_space<smem>>
    %227 = vector.broadcast %226 : f32 to vector<2x256xf32>
    %228 = arith.mulf %227, %12 : vector<2x256xf32>
    %229 = arith.addf %217, %228 : vector<2x256xf32>
    %c2_104 = arith.constant 2 : index
    %c22_105 = arith.constant 22 : index
    %230 = memref.load %arg1[%c2_104, %c22_105] : memref<3x27xf32, #tpu.memory_space<smem>>
    %231 = vector.broadcast %230 : f32 to vector<2x256xf32>
    %232 = arith.mulf %231, %12 : vector<2x256xf32>
    %233 = arith.addf %221, %232 : vector<2x256xf32>
    %c5 = arith.constant 5 : index
    %c0_106 = arith.constant 0 : index
    %c0_107 = arith.constant 0 : index
    %234 = vector.load %arg3[%c5, %c0_106, %c0_107] : memref<9x2x256xf32, #tpu.memory_space<vmem>>, vector<1x2x256xf32>
    %235 = vector.shape_cast %234 : vector<1x2x256xf32> to vector<2x256xf32>
    %c255_i32 = arith.constant 255 : i32
    %236 = tpu.dynamic_rotate %6 by %c255_i32 dim 1 : vector<2x256xf32>, i32 -> vector<2x256xf32>
    %237 = arith.mulf %236, %235 : vector<2x256xf32>
    %c0_108 = arith.constant 0 : index
    %c5_109 = arith.constant 5 : index
    %238 = memref.load %arg1[%c0_108, %c5_109] : memref<3x27xf32, #tpu.memory_space<smem>>
    %239 = vector.broadcast %238 : f32 to vector<2x256xf32>
    %240 = arith.mulf %239, %237 : vector<2x256xf32>
    %241 = arith.addf %225, %240 : vector<2x256xf32>
    %c1_110 = arith.constant 1 : index
    %c5_111 = arith.constant 5 : index
    %242 = memref.load %arg1[%c1_110, %c5_111] : memref<3x27xf32, #tpu.memory_space<smem>>
    %243 = vector.broadcast %242 : f32 to vector<2x256xf32>
    %244 = arith.mulf %243, %237 : vector<2x256xf32>
    %245 = arith.addf %229, %244 : vector<2x256xf32>
    %c2_112 = arith.constant 2 : index
    %c5_113 = arith.constant 5 : index
    %246 = memref.load %arg1[%c2_112, %c5_113] : memref<3x27xf32, #tpu.memory_space<smem>>
    %247 = vector.broadcast %246 : f32 to vector<2x256xf32>
    %248 = arith.mulf %247, %237 : vector<2x256xf32>
    %249 = arith.addf %233, %248 : vector<2x256xf32>
    %c255_i32_114 = arith.constant 255 : i32
    %250 = tpu.dynamic_rotate %9 by %c255_i32_114 dim 1 : vector<2x256xf32>, i32 -> vector<2x256xf32>
    %251 = arith.mulf %250, %235 : vector<2x256xf32>
    %c0_115 = arith.constant 0 : index
    %c14 = arith.constant 14 : index
    %252 = memref.load %arg1[%c0_115, %c14] : memref<3x27xf32, #tpu.memory_space<smem>>
    %253 = vector.broadcast %252 : f32 to vector<2x256xf32>
    %254 = arith.mulf %253, %251 : vector<2x256xf32>
    %255 = arith.addf %241, %254 : vector<2x256xf32>
    %c1_116 = arith.constant 1 : index
    %c14_117 = arith.constant 14 : index
    %256 = memref.load %arg1[%c1_116, %c14_117] : memref<3x27xf32, #tpu.memory_space<smem>>
    %257 = vector.broadcast %256 : f32 to vector<2x256xf32>
    %258 = arith.mulf %257, %251 : vector<2x256xf32>
    %259 = arith.addf %245, %258 : vector<2x256xf32>
    %c2_118 = arith.constant 2 : index
    %c14_119 = arith.constant 14 : index
    %260 = memref.load %arg1[%c2_118, %c14_119] : memref<3x27xf32, #tpu.memory_space<smem>>
    %261 = vector.broadcast %260 : f32 to vector<2x256xf32>
    %262 = arith.mulf %261, %251 : vector<2x256xf32>
    %263 = arith.addf %249, %262 : vector<2x256xf32>
    %c255_i32_120 = arith.constant 255 : i32
    %264 = tpu.dynamic_rotate %12 by %c255_i32_120 dim 1 : vector<2x256xf32>, i32 -> vector<2x256xf32>
    %265 = arith.mulf %264, %235 : vector<2x256xf32>
    %c0_121 = arith.constant 0 : index
    %c23 = arith.constant 23 : index
    %266 = memref.load %arg1[%c0_121, %c23] : memref<3x27xf32, #tpu.memory_space<smem>>
    %267 = vector.broadcast %266 : f32 to vector<2x256xf32>
    %268 = arith.mulf %267, %265 : vector<2x256xf32>
    %269 = arith.addf %255, %268 : vector<2x256xf32>
    %c1_122 = arith.constant 1 : index
    %c23_123 = arith.constant 23 : index
    %270 = memref.load %arg1[%c1_122, %c23_123] : memref<3x27xf32, #tpu.memory_space<smem>>
    %271 = vector.broadcast %270 : f32 to vector<2x256xf32>
    %272 = arith.mulf %271, %265 : vector<2x256xf32>
    %273 = arith.addf %259, %272 : vector<2x256xf32>
    %c2_124 = arith.constant 2 : index
    %c23_125 = arith.constant 23 : index
    %274 = memref.load %arg1[%c2_124, %c23_125] : memref<3x27xf32, #tpu.memory_space<smem>>
    %275 = vector.broadcast %274 : f32 to vector<2x256xf32>
    %276 = arith.mulf %275, %265 : vector<2x256xf32>
    %277 = arith.addf %263, %276 : vector<2x256xf32>
    %c6 = arith.constant 6 : index
    %c0_126 = arith.constant 0 : index
    %c0_127 = arith.constant 0 : index
    %278 = vector.load %arg3[%c6, %c0_126, %c0_127] : memref<9x2x256xf32, #tpu.memory_space<vmem>>, vector<1x2x256xf32>
    %279 = vector.shape_cast %278 : vector<1x2x256xf32> to vector<2x256xf32>
    %c241_i32 = arith.constant 241 : i32
    %280 = tpu.dynamic_rotate %6 by %c241_i32 dim 1 : vector<2x256xf32>, i32 -> vector<2x256xf32>
    %281 = arith.mulf %280, %279 : vector<2x256xf32>
    %c0_128 = arith.constant 0 : index
    %c6_129 = arith.constant 6 : index
    %282 = memref.load %arg1[%c0_128, %c6_129] : memref<3x27xf32, #tpu.memory_space<smem>>
    %283 = vector.broadcast %282 : f32 to vector<2x256xf32>
    %284 = arith.mulf %283, %281 : vector<2x256xf32>
    %285 = arith.addf %269, %284 : vector<2x256xf32>
    %c1_130 = arith.constant 1 : index
    %c6_131 = arith.constant 6 : index
    %286 = memref.load %arg1[%c1_130, %c6_131] : memref<3x27xf32, #tpu.memory_space<smem>>
    %287 = vector.broadcast %286 : f32 to vector<2x256xf32>
    %288 = arith.mulf %287, %281 : vector<2x256xf32>
    %289 = arith.addf %273, %288 : vector<2x256xf32>
    %c2_132 = arith.constant 2 : index
    %c6_133 = arith.constant 6 : index
    %290 = memref.load %arg1[%c2_132, %c6_133] : memref<3x27xf32, #tpu.memory_space<smem>>
    %291 = vector.broadcast %290 : f32 to vector<2x256xf32>
    %292 = arith.mulf %291, %281 : vector<2x256xf32>
    %293 = arith.addf %277, %292 : vector<2x256xf32>
    %c241_i32_134 = arith.constant 241 : i32
    %294 = tpu.dynamic_rotate %9 by %c241_i32_134 dim 1 : vector<2x256xf32>, i32 -> vector<2x256xf32>
    %295 = arith.mulf %294, %279 : vector<2x256xf32>
    %c0_135 = arith.constant 0 : index
    %c15 = arith.constant 15 : index
    %296 = memref.load %arg1[%c0_135, %c15] : memref<3x27xf32, #tpu.memory_space<smem>>
    %297 = vector.broadcast %296 : f32 to vector<2x256xf32>
    %298 = arith.mulf %297, %295 : vector<2x256xf32>
    %299 = arith.addf %285, %298 : vector<2x256xf32>
    %c1_136 = arith.constant 1 : index
    %c15_137 = arith.constant 15 : index
    %300 = memref.load %arg1[%c1_136, %c15_137] : memref<3x27xf32, #tpu.memory_space<smem>>
    %301 = vector.broadcast %300 : f32 to vector<2x256xf32>
    %302 = arith.mulf %301, %295 : vector<2x256xf32>
    %303 = arith.addf %289, %302 : vector<2x256xf32>
    %c2_138 = arith.constant 2 : index
    %c15_139 = arith.constant 15 : index
    %304 = memref.load %arg1[%c2_138, %c15_139] : memref<3x27xf32, #tpu.memory_space<smem>>
    %305 = vector.broadcast %304 : f32 to vector<2x256xf32>
    %306 = arith.mulf %305, %295 : vector<2x256xf32>
    %307 = arith.addf %293, %306 : vector<2x256xf32>
    %c241_i32_140 = arith.constant 241 : i32
    %308 = tpu.dynamic_rotate %12 by %c241_i32_140 dim 1 : vector<2x256xf32>, i32 -> vector<2x256xf32>
    %309 = arith.mulf %308, %279 : vector<2x256xf32>
    %c0_141 = arith.constant 0 : index
    %c24 = arith.constant 24 : index
    %310 = memref.load %arg1[%c0_141, %c24] : memref<3x27xf32, #tpu.memory_space<smem>>
    %311 = vector.broadcast %310 : f32 to vector<2x256xf32>
    %312 = arith.mulf %311, %309 : vector<2x256xf32>
    %313 = arith.addf %299, %312 : vector<2x256xf32>
    %c1_142 = arith.constant 1 : index
    %c24_143 = arith.constant 24 : index
    %314 = memref.load %arg1[%c1_142, %c24_143] : memref<3x27xf32, #tpu.memory_space<smem>>
    %315 = vector.broadcast %314 : f32 to vector<2x256xf32>
    %316 = arith.mulf %315, %309 : vector<2x256xf32>
    %317 = arith.addf %303, %316 : vector<2x256xf32>
    %c2_144 = arith.constant 2 : index
    %c24_145 = arith.constant 24 : index
    %318 = memref.load %arg1[%c2_144, %c24_145] : memref<3x27xf32, #tpu.memory_space<smem>>
    %319 = vector.broadcast %318 : f32 to vector<2x256xf32>
    %320 = arith.mulf %319, %309 : vector<2x256xf32>
    %321 = arith.addf %307, %320 : vector<2x256xf32>
    %c7 = arith.constant 7 : index
    %c0_146 = arith.constant 0 : index
    %c0_147 = arith.constant 0 : index
    %322 = vector.load %arg3[%c7, %c0_146, %c0_147] : memref<9x2x256xf32, #tpu.memory_space<vmem>>, vector<1x2x256xf32>
    %323 = vector.shape_cast %322 : vector<1x2x256xf32> to vector<2x256xf32>
    %c240_i32 = arith.constant 240 : i32
    %324 = tpu.dynamic_rotate %6 by %c240_i32 dim 1 : vector<2x256xf32>, i32 -> vector<2x256xf32>
    %325 = arith.mulf %324, %323 : vector<2x256xf32>
    %c0_148 = arith.constant 0 : index
    %c7_149 = arith.constant 7 : index
    %326 = memref.load %arg1[%c0_148, %c7_149] : memref<3x27xf32, #tpu.memory_space<smem>>
    %327 = vector.broadcast %326 : f32 to vector<2x256xf32>
    %328 = arith.mulf %327, %325 : vector<2x256xf32>
    %329 = arith.addf %313, %328 : vector<2x256xf32>
    %c1_150 = arith.constant 1 : index
    %c7_151 = arith.constant 7 : index
    %330 = memref.load %arg1[%c1_150, %c7_151] : memref<3x27xf32, #tpu.memory_space<smem>>
    %331 = vector.broadcast %330 : f32 to vector<2x256xf32>
    %332 = arith.mulf %331, %325 : vector<2x256xf32>
    %333 = arith.addf %317, %332 : vector<2x256xf32>
    %c2_152 = arith.constant 2 : index
    %c7_153 = arith.constant 7 : index
    %334 = memref.load %arg1[%c2_152, %c7_153] : memref<3x27xf32, #tpu.memory_space<smem>>
    %335 = vector.broadcast %334 : f32 to vector<2x256xf32>
    %336 = arith.mulf %335, %325 : vector<2x256xf32>
    %337 = arith.addf %321, %336 : vector<2x256xf32>
    %c240_i32_154 = arith.constant 240 : i32
    %338 = tpu.dynamic_rotate %9 by %c240_i32_154 dim 1 : vector<2x256xf32>, i32 -> vector<2x256xf32>
    %339 = arith.mulf %338, %323 : vector<2x256xf32>
    %c0_155 = arith.constant 0 : index
    %c16 = arith.constant 16 : index
    %340 = memref.load %arg1[%c0_155, %c16] : memref<3x27xf32, #tpu.memory_space<smem>>
    %341 = vector.broadcast %340 : f32 to vector<2x256xf32>
    %342 = arith.mulf %341, %339 : vector<2x256xf32>
    %343 = arith.addf %329, %342 : vector<2x256xf32>
    %c1_156 = arith.constant 1 : index
    %c16_157 = arith.constant 16 : index
    %344 = memref.load %arg1[%c1_156, %c16_157] : memref<3x27xf32, #tpu.memory_space<smem>>
    %345 = vector.broadcast %344 : f32 to vector<2x256xf32>
    %346 = arith.mulf %345, %339 : vector<2x256xf32>
    %347 = arith.addf %333, %346 : vector<2x256xf32>
    %c2_158 = arith.constant 2 : index
    %c16_159 = arith.constant 16 : index
    %348 = memref.load %arg1[%c2_158, %c16_159] : memref<3x27xf32, #tpu.memory_space<smem>>
    %349 = vector.broadcast %348 : f32 to vector<2x256xf32>
    %350 = arith.mulf %349, %339 : vector<2x256xf32>
    %351 = arith.addf %337, %350 : vector<2x256xf32>
    %c240_i32_160 = arith.constant 240 : i32
    %352 = tpu.dynamic_rotate %12 by %c240_i32_160 dim 1 : vector<2x256xf32>, i32 -> vector<2x256xf32>
    %353 = arith.mulf %352, %323 : vector<2x256xf32>
    %c0_161 = arith.constant 0 : index
    %c25 = arith.constant 25 : index
    %354 = memref.load %arg1[%c0_161, %c25] : memref<3x27xf32, #tpu.memory_space<smem>>
    %355 = vector.broadcast %354 : f32 to vector<2x256xf32>
    %356 = arith.mulf %355, %353 : vector<2x256xf32>
    %357 = arith.addf %343, %356 : vector<2x256xf32>
    %c1_162 = arith.constant 1 : index
    %c25_163 = arith.constant 25 : index
    %358 = memref.load %arg1[%c1_162, %c25_163] : memref<3x27xf32, #tpu.memory_space<smem>>
    %359 = vector.broadcast %358 : f32 to vector<2x256xf32>
    %360 = arith.mulf %359, %353 : vector<2x256xf32>
    %361 = arith.addf %347, %360 : vector<2x256xf32>
    %c2_164 = arith.constant 2 : index
    %c25_165 = arith.constant 25 : index
    %362 = memref.load %arg1[%c2_164, %c25_165] : memref<3x27xf32, #tpu.memory_space<smem>>
    %363 = vector.broadcast %362 : f32 to vector<2x256xf32>
    %364 = arith.mulf %363, %353 : vector<2x256xf32>
    %365 = arith.addf %351, %364 : vector<2x256xf32>
    %c8 = arith.constant 8 : index
    %c0_166 = arith.constant 0 : index
    %c0_167 = arith.constant 0 : index
    %366 = vector.load %arg3[%c8, %c0_166, %c0_167] : memref<9x2x256xf32, #tpu.memory_space<vmem>>, vector<1x2x256xf32>
    %367 = vector.shape_cast %366 : vector<1x2x256xf32> to vector<2x256xf32>
    %c239_i32 = arith.constant 239 : i32
    %368 = tpu.dynamic_rotate %6 by %c239_i32 dim 1 : vector<2x256xf32>, i32 -> vector<2x256xf32>
    %369 = arith.mulf %368, %367 : vector<2x256xf32>
    %c0_168 = arith.constant 0 : index
    %c8_169 = arith.constant 8 : index
    %370 = memref.load %arg1[%c0_168, %c8_169] : memref<3x27xf32, #tpu.memory_space<smem>>
    %371 = vector.broadcast %370 : f32 to vector<2x256xf32>
    %372 = arith.mulf %371, %369 : vector<2x256xf32>
    %373 = arith.addf %357, %372 : vector<2x256xf32>
    %c1_170 = arith.constant 1 : index
    %c8_171 = arith.constant 8 : index
    %374 = memref.load %arg1[%c1_170, %c8_171] : memref<3x27xf32, #tpu.memory_space<smem>>
    %375 = vector.broadcast %374 : f32 to vector<2x256xf32>
    %376 = arith.mulf %375, %369 : vector<2x256xf32>
    %377 = arith.addf %361, %376 : vector<2x256xf32>
    %c2_172 = arith.constant 2 : index
    %c8_173 = arith.constant 8 : index
    %378 = memref.load %arg1[%c2_172, %c8_173] : memref<3x27xf32, #tpu.memory_space<smem>>
    %379 = vector.broadcast %378 : f32 to vector<2x256xf32>
    %380 = arith.mulf %379, %369 : vector<2x256xf32>
    %381 = arith.addf %365, %380 : vector<2x256xf32>
    %c239_i32_174 = arith.constant 239 : i32
    %382 = tpu.dynamic_rotate %9 by %c239_i32_174 dim 1 : vector<2x256xf32>, i32 -> vector<2x256xf32>
    %383 = arith.mulf %382, %367 : vector<2x256xf32>
    %c0_175 = arith.constant 0 : index
    %c17 = arith.constant 17 : index
    %384 = memref.load %arg1[%c0_175, %c17] : memref<3x27xf32, #tpu.memory_space<smem>>
    %385 = vector.broadcast %384 : f32 to vector<2x256xf32>
    %386 = arith.mulf %385, %383 : vector<2x256xf32>
    %387 = arith.addf %373, %386 : vector<2x256xf32>
    %c1_176 = arith.constant 1 : index
    %c17_177 = arith.constant 17 : index
    %388 = memref.load %arg1[%c1_176, %c17_177] : memref<3x27xf32, #tpu.memory_space<smem>>
    %389 = vector.broadcast %388 : f32 to vector<2x256xf32>
    %390 = arith.mulf %389, %383 : vector<2x256xf32>
    %391 = arith.addf %377, %390 : vector<2x256xf32>
    %c2_178 = arith.constant 2 : index
    %c17_179 = arith.constant 17 : index
    %392 = memref.load %arg1[%c2_178, %c17_179] : memref<3x27xf32, #tpu.memory_space<smem>>
    %393 = vector.broadcast %392 : f32 to vector<2x256xf32>
    %394 = arith.mulf %393, %383 : vector<2x256xf32>
    %395 = arith.addf %381, %394 : vector<2x256xf32>
    %c239_i32_180 = arith.constant 239 : i32
    %396 = tpu.dynamic_rotate %12 by %c239_i32_180 dim 1 : vector<2x256xf32>, i32 -> vector<2x256xf32>
    %397 = arith.mulf %396, %367 : vector<2x256xf32>
    %c0_181 = arith.constant 0 : index
    %c26 = arith.constant 26 : index
    %398 = memref.load %arg1[%c0_181, %c26] : memref<3x27xf32, #tpu.memory_space<smem>>
    %399 = vector.broadcast %398 : f32 to vector<2x256xf32>
    %400 = arith.mulf %399, %397 : vector<2x256xf32>
    %401 = arith.addf %387, %400 : vector<2x256xf32>
    %c1_182 = arith.constant 1 : index
    %c26_183 = arith.constant 26 : index
    %402 = memref.load %arg1[%c1_182, %c26_183] : memref<3x27xf32, #tpu.memory_space<smem>>
    %403 = vector.broadcast %402 : f32 to vector<2x256xf32>
    %404 = arith.mulf %403, %397 : vector<2x256xf32>
    %405 = arith.addf %391, %404 : vector<2x256xf32>
    %c2_184 = arith.constant 2 : index
    %c26_185 = arith.constant 26 : index
    %406 = memref.load %arg1[%c2_184, %c26_185] : memref<3x27xf32, #tpu.memory_space<smem>>
    %407 = vector.broadcast %406 : f32 to vector<2x256xf32>
    %408 = arith.mulf %407, %397 : vector<2x256xf32>
    %409 = arith.addf %395, %408 : vector<2x256xf32>
    %c0_186 = arith.constant 0 : index
    %410 = arith.index_cast %3 : i32 to index
    %c0_187 = arith.constant 0 : index
    %411 = vector.load %arg5[%c0_186, %410, %c0_187] : memref<3x2x256xf32, #tpu.memory_space<vmem>>, vector<1x2x256xf32>
    %412 = vector.shape_cast %411 : vector<1x2x256xf32> to vector<2x256xf32>
    %413 = vector.shape_cast %401 : vector<2x256xf32> to vector<1x2x256xf32>
    tpu.vector_store %arg5[%c0_186, %410, %c0_187], %413 {strides = array<i32>} : memref<3x2x256xf32, #tpu.memory_space<vmem>>, vector<1x2x256xf32>,
    %c1_188 = arith.constant 1 : index
    %414 = arith.index_cast %3 : i32 to index
    %c0_189 = arith.constant 0 : index
    %415 = vector.load %arg5[%c1_188, %414, %c0_189] : memref<3x2x256xf32, #tpu.memory_space<vmem>>, vector<1x2x256xf32>
    %416 = vector.shape_cast %415 : vector<1x2x256xf32> to vector<2x256xf32>
    %417 = vector.shape_cast %405 : vector<2x256xf32> to vector<1x2x256xf32>
    tpu.vector_store %arg5[%c1_188, %414, %c0_189], %417 {strides = array<i32>} : memref<3x2x256xf32, #tpu.memory_space<vmem>>, vector<1x2x256xf32>,
    %c2_190 = arith.constant 2 : index
    %418 = arith.index_cast %3 : i32 to index
    %c0_191 = arith.constant 0 : index
    %419 = vector.load %arg5[%c2_190, %418, %c0_191] : memref<3x2x256xf32, #tpu.memory_space<vmem>>, vector<1x2x256xf32>
    %420 = vector.shape_cast %419 : vector<1x2x256xf32> to vector<2x256xf32>
    %421 = vector.shape_cast %409 : vector<2x256xf32> to vector<1x2x256xf32>
    tpu.vector_store %arg5[%c2_190, %418, %c0_191], %421 {strides = array<i32>} : memref<3x2x256xf32, #tpu.memory_space<vmem>>, vector<1x2x256xf32>,
    %c1_i32_192 = arith.constant 1 : i32
    return
  }
  func.func @transform_0(%arg0: i32) -> (i32, i32) {
    %c0_i32 = arith.constant 0 : i32
    %c0_i32_0 = arith.constant 0 : i32
    %c0_i32_1 = arith.constant 0 : i32
    return %c0_i32, %c0_i32_0 : i32, i32
  }
  func.func @transform_1(%arg0: i32) -> i32 {
    %c0_i32 = arith.constant 0 : i32
    %c0_i32_0 = arith.constant 0 : i32
    return %c0_i32 : i32
  }
  func.func @transform_2(%arg0: i32) -> (i32, i32, i32) {
    %c0_i32 = arith.constant 0 : i32
    %c0_i32_0 = arith.constant 0 : i32
    %c0_i32_1 = arith.constant 0 : i32
    %c0_i32_2 = arith.constant 0 : i32
    return %c0_i32, %c0_i32_0, %c0_i32_1 : i32, i32, i32
  }
  func.func @transform_3(%arg0: i32) -> (i32, i32, i32) {
    %c0_i32 = arith.constant 0 : i32
    %c0_i32_0 = arith.constant 0 : i32
    %c0_i32_1 = arith.constant 0 : i32
    return %c0_i32, %arg0, %c0_i32_0 : i32, i32, i32
  }
  func.func @transform_4(%arg0: i32) -> (i32, i32, i32) {
    %c0_i32 = arith.constant 0 : i32
    %c0_i32_0 = arith.constant 0 : i32
    %c0_i32_1 = arith.constant 0 : i32
    return %c0_i32, %arg0, %c0_i32_0 : i32, i32, i32
  }
}

</mosaic_0001>

<bundles_post_ra>
// kernel: tpu_custom_call.1
= control target key start
LH: loop header
LB: loop body
LE: loop exit
PB: predicated region body
PF: predicated region fallthrough
CT: control target
= control target key end

     0   :  { %s2930_s0 = inlined_call_operand.hbm [shape: f32[3,27], index: 0, kind: input, shape index: {}]   ;;  %s2931_s1 = inlined_call_operand.vmem [shape: f32[3], index: 1, kind: input, shape index: {}]   ;;  %s2932_s2 = inlined_call_operand.hbm [shape: f32[9,2,256], index: 2, kind: input, shape index: {}]   ;;  %s2933_s3 = inlined_call_operand.hbm [shape: f32[3,2,256], index: 3, kind: input, shape index: {}]   ;;  %s2934_s4 = inlined_call_operand.hbm [shape: f32[3,2,256], index: 4, kind: output, shape index: {}]  }
   0x1   :  { %3013 = sst [smem:[#allocation63_spill]] %s2934_s4 }
   0x2   :  { %9 = vsyncpa [#allocation5], 0 }
   0x3   :  { %10 = vsyncpa [#allocation6], 0 }
   0x4   :  { %11 = vsyncpa [#allocation3], 0 }
   0x5   :  { %12 = vsyncpa [#allocation10], 0 }
   0x6   :  { %13 = vsyncpa [#allocation4], 0  ;;  %s28_s17 = sshll.u32 %s2931_s1, 4  ;;  %s1755_s20 = scalar_lea.hbm %s2930_s0, 64  ;;  %s29_s17 = int_to_ptr.vmem [resolvable:$true] %s28_s17 }
   0x7   :  { %p1756_p0 = scmp.ne.s32.totalorder %s2930_s0, %s1755_s20  ;;  %p1759_p1 = scmp.lt.u32.totalorder %s1755_s20, %s2930_s0 }
   0x9   :  { %p1761_p2 = pnand %p1759_p1, %p1756_p0 }
   0xb   :  { %1764 = shalt.err (!%p1761_p2)
}
   0xc   :  { %s1853_s25 = smov [#allocation2]   ;;  %s1765_s1 = scalar_lea.vmem %s29_s17, 16 }
   0xd   :  { %21 = dma.hbm_to_smem %s2930_s0, 64, %s1853_s25, [#allocation5]  }
   0xe   :  { %p1766_p3 = scmp.ne.s32.totalorder %s29_s17, %s1765_s1  ;;  %p1770_p4 = scmp.lt.s32.totalorder %s29_s17, %s29_s17 }
   0xf   :  { %p1771_p5 = scmp.lt.s32.totalorder %s1765_s1, %s1765_s1 }
  0x11   :  { %p1772_p6 = por %p1771_p5, %p1770_p4 }
  0x13   :  { %p1773_p7 = pnand %p1772_p6, %p1766_p3 }
  0x15   :  { %1776 = shalt.err (!%p1773_p7)
}
  0x16   :  { %s1854_s28 = smov [#allocation7]   ;;  %s1855_s29 = smov [#allocation8]  }
  0x17   :  { %31 = dma.vmem_to_smem %s29_s17, 16, %s1854_s28, [#allocation6]  }
  0x18   :  { %s37_s30 = sshll.u32 %s1855_s29, 4  ;;  %s1777_s7 = scalar_lea.hbm %s2932_s2, 576  ;;  %s38_s30 = int_to_ptr.vmem [resolvable:$true] %s37_s30 }
  0x19   :  { %p1778_p8 = scmp.ne.s32.totalorder %s2932_s2, %s1777_s7  ;;  %p1781_p9 = scmp.lt.u32.totalorder %s1777_s7, %s2932_s2 }
  0x1b   :  { %p1783_p10 = pnand %p1781_p9, %p1778_p8 }
  0x1d   :  { %1786 = shalt.err (!%p1783_p10)
}
  0x1e   :  { %s1787_s11 = scalar_lea.vmem %s38_s30, 576  ;;  %p1792_p12 = scmp.lt.s32.totalorder %s38_s30, %s38_s30 }
  0x1f   :  { %p1788_p11 = scmp.ne.s32.totalorder %s38_s30, %s1787_s11  ;;  %p1793_p13 = scmp.lt.s32.totalorder %s1787_s11, %s1787_s11 }
  0x21   :  { %p1794_p0 = por %p1793_p13, %p1792_p12 }
  0x23   :  { %p1795_p1 = pnand %p1794_p0, %p1788_p11 }
  0x25   :  { %1798 = shalt.err (!%p1795_p1)
}
  0x26   :  { %s2935_s12 = smov 64   ;;  %s2936_s13 = smov 4  }
  0x27   :  { %43 = dma.hbm_to_vmem [thread:$0]  %s2932_s2, 576, %s38_s30, [#allocation3], %s2935_s12, %s2935_s12, %s2936_s13  }
  0x28   :  { %s1858_s16 = smov [#allocation9]   ;;  %s1799_s20 = scalar_lea.hbm %s2933_s3, 192 }
  0x29   :  { %s49_s17 = sshll.u32 %s1858_s16, 4  ;;  %p1800_p2 = scmp.ne.s32.totalorder %s2933_s3, %s1799_s20  ;;  %s50_s17 = int_to_ptr.vmem [resolvable:$true] %s49_s17 }
  0x2a   :  { %p1803_p3 = scmp.lt.u32.totalorder %s1799_s20, %s2933_s3 }
  0x2c   :  { %p1805_p4 = pnand %p1803_p3, %p1800_p2 }
  0x2e   :  { %1808 = shalt.err (!%p1805_p4)
}
  0x2f   :  { %s1809_s25 = scalar_lea.vmem %s50_s17, 192  ;;  %p1814_p6 = scmp.lt.s32.totalorder %s50_s17, %s50_s17 }
  0x30   :  { %p1810_p5 = scmp.ne.s32.totalorder %s50_s17, %s1809_s25  ;;  %p1815_p7 = scmp.lt.s32.totalorder %s1809_s25, %s1809_s25 }
  0x32   :  { %p1816_p8 = por %p1815_p7, %p1814_p6 }
  0x34   :  { %p1817_p9 = pnand %p1816_p8, %p1810_p5 }
  0x36   :  { %1820 = shalt.err (!%p1817_p9)
}
  0x37   :  { %55 = dma.hbm_to_vmem [thread:$0]  %s2933_s3, 192, %s50_s17, [#allocation10], %s2935_s12, %s2935_s12, %s2936_s13  }
  0x38   :  { %1843 = dma.done.wait [#allocation5], 64  }
  0x39   :  { %1844 = vsyncadd [#allocation5], 4294967232 }
  0x3a   :  { %1845 = dma.done.wait [#allocation6], 16  }
  0x3b   :  { %1846 = vsyncadd [#allocation6], 4294967280 }
  0x3c   :  { %1847 = dma.done.wait [#allocation3], 576  }
  0x3d   :  { %1848 = vsyncadd [#allocation3], 4294966720 }
  0x3e   :  { %1849 = dma.done.wait [#allocation10], 192  }
  0x3f   :  { %1850 = vsyncadd [#allocation10], 4294967104 }
  0x40   :  { %68 = sfence }
  0x41   :  { %v95_v0 = vlaneseq  ;;  %v1859_v1 = vmov 1983009808   ;;  %v1940_v5 = vld [vmem:[#allocation9 + $0x4] sm:$0xf]  ;;  %v1942_v6 = vld [vmem:[#allocation9] sm:$0xf] }
  0x42   :  { %v93_v2 = vunpack.c.l.s4 %v1859_v1  ;;  %v1946_v8 = vld [vmem:[#allocation9 + $0x8] sm:$0xf]  ;;  %s1860_s3 = smov 17   ;;  %s1861_s27 = smov 16  }
  0x43   :  { %v96_v3 = vshrl.u32 %v95_v0, 7  ;;  %s1862_s1 = smov 15   ;;  %s1863_s28 = smov 1   ;;  %v2113_v17 = vand.u32 127, %v95_v0 }
  0x44   :  { %v94_v4 = vunpack.c.0.s8 %v93_v2  ;;  %s1864_s29 = smov 127   ;;  %s1865_s30 = smov 113   ;;  %v2090_v15 = vld.sshfl [vmem:[#allocation8] sm:$0x33 pattern:$0x76325410] }
  0x45   :  { %s1866_s5 = smov 112   ;;  %s2010_s6 = sld [smem:[#allocation2 + $0x9]]  ;;  %v2102_v16 = vld.sshfl [vmem:[#allocation8 + $0x4] sm:$0x33 pattern:$0x76325410]  ;;  %v2123_v20 = vcombine.high %v2090_v15, %v2090_v15 }
  0x46   :  { %v1944_v7 = vsub.s32 %v94_v4, %v96_v3  ;;  %s2012_s7 = sld [smem:[#allocation2 + $0x89]]  ;;  %s2016_s9 = sld [smem:[#allocation2 + $0x12]]  ;;  %v2136_v28 = vld.sshfl [vmem:[#allocation8 + $0x8] sm:$0x33 pattern:$0x76325410]  ;;  %v2151_v32 = vcombine.high %v2102_v16, %v2102_v16 }
  0x47   :  { %s2014_s8 = sld [smem:[#allocation2 + $0x109]]  ;;  %s2018_s0 = sld [smem:[#allocation2 + $0x92]]  ;;  %v2163_v37 = vld.sshfl [vmem:[#allocation8 + $0xc] sm:$0x33 pattern:$0x76325410]  ;;  %v2187_v46 = vcombine.high %v2136_v28, %v2136_v28 }
  0x48   :  { %v1950_v9 = vrot.slane %v1940_v5, %v1944_v7  ;;  %v1954_v10 = vrot.slane %v1942_v6, %v1944_v7  ;;  %v1964_v12 = vrot.slane %v1946_v8, %v1944_v7  ;;  %s2020_s10 = sld [smem:[#allocation2 + $0x112]]  ;;  %s2024_s11 = sld [smem:[#allocation7]]  ;;  %v2192_v50 = vld.sshfl [vmem:[#allocation8 + $0x14] sm:$0x33 pattern:$0x76325410]  ;;  %v2210_v57 = vcombine.high %v2163_v37, %v2163_v37 }
  0x49   :  { %s2026_s14 = sld [smem:[#allocation7 + $0x1]]  ;;  %s2028_s15 = sld [smem:[#allocation7 + $0x2]]  ;;  %vm108_vm0 = vcmp.lt.s32.totalorder %v2113_v17, 17  ;;  %vm312_vm1 = vcmp.lt.s32.totalorder %v2113_v17, 16  ;;  %vm494_vm2 = vcmp.lt.s32.totalorder %v2113_v17, 15  ;;  %vm676_vm3 = vcmp.lt.s32.totalorder %v2113_v17, 1 }
  0x4a   :  { %183 = vrot.lane.b32.xlu1 %v1950_v9, %s1860_s3  ;;  %102 = vrot.lane.b32.xlu0 %v1954_v10, %s1860_s3  ;;  %v1960_v11 = vcombine.high %v1950_v9, %v1950_v9  ;;  %v1970_v13 = vcombine.high %v1964_v12, %v1964_v12  ;;  %v1974_v14 = vcombine.high %v1954_v10, %v1954_v10  ;;  %s2030_s16 = sld [smem:[#allocation2]]  ;;  %s2036_s19 = sld [smem:[#allocation2 + $0x1]]  ;;  %v2261_v3 = vld.sshfl [vmem:[#allocation8 + $0x18] sm:$0x33 pattern:$0x76325410] }
  0x4b   :  { %3014 = sst [smem:[#allocation17_spill]] %s2010_s6  ;;  %s2038_s20 = sld [smem:[#allocation2 + $0x81]]  ;;  %v192_v21 = vstv %s2010_s6  ;;  %v2287_v0 = vld.sshfl [vmem:[#allocation8 + $0x1c] sm:$0x33 pattern:$0x76325410] }
  0x4c   :  { %3015 = sst [smem:[#allocation18_spill]] %s2012_s7  ;;  %s2032_s17 = sld [smem:[#allocation2 + $0x80]]  ;;  %v208_v22 = vstv %s2012_s7  ;;  %v259_v25 = vstv %s2016_s9  ;;  %v2330_v55 = vcombine.high %v2287_v0, %v2287_v0  ;;  %v2333_v53 = vld.sshfl [vmem:[#allocation8 + $0x20] sm:$0x33 pattern:$0x76325410] }
  0x4d   :  { %3016 = sst [smem:[#allocation19_spill]] %s2014_s8  ;;  %s2034_s18 = sld [smem:[#allocation2 + $0x100]]  ;;  %v224_v24 = vstv %s2014_s8  ;;  %v275_v26 = vstv %s2018_s0  ;;  %v2354_v60 = vcombine.high %v2333_v53, %v2333_v53  ;;  %vm894_vm4 = vcmp.lt.s32.totalorder %v2113_v17, 127 }
  0x4e   :  { %185 = vrot.lane.b32.xlu1 %v1960_v11, %s1860_s3  ;;  %250 = vrot.lane.b32.xlu0 %v1964_v12, %s1860_s3  ;;  %3017 = sst [smem:[#allocation20_spill]] %s2016_s9  ;;  %s2042_s21 = sld [smem:[#allocation2 + $0x101]]  ;;  %v82_v18 = vstv %s2024_s11  ;;  %v291_v27 = vstv %s2020_s10  ;;  %vm1076_vm5 = vcmp.lt.s32.totalorder %v2113_v17, 113  ;;  %vm1258_vm6 = vcmp.lt.s32.totalorder %v2113_v17, 112 }
  0x4f   :  { %3018 = sst [smem:[#allocation21_spill]] %s2018_s0  ;;  %s2044_s22 = sld [smem:[#allocation2 + $0xa]]  ;;  %v85_v19 = vstv %s2026_s14  ;;  %v88_v23 = vstv %s2028_s15  ;;  %v2147_v31 = vadd.f32 %v82_v18, %v1942_v6  ;;  %vm1440_vm7 = vcmp.lt.s32.totalorder %v2113_v17, 111 }
  0x50   :  { %3019 = sst [smem:[#allocation22_spill]] %s2020_s10  ;;  %s2046_s23 = sld [smem:[#allocation2 + $0x8a]]  ;;  %v2143_v29 = vadd.f32 %v85_v19, %v1940_v5  ;;  %v125_v30 = vstv %s2030_s16  ;;  %v2158_v33 = vadd.f32 %v88_v23, %v1946_v8  ;;  %v329_v36 = vstv %s2036_s19 }
  0x51   :  { %3020 = sst [smem:[#allocation23_spill]] %s2030_s16  ;;  %s2048_s24 = sld [smem:[#allocation2 + $0x10a]]  ;;  %v345_v38 = vstv %s2038_s20 }
  0x52   :  { %252 = vrot.lane.b32.xlu1 %v1970_v13, %s1860_s3  ;;  %104 = vrot.lane.b32.xlu0 %v1974_v14, %s1860_s3  ;;  %3021 = sst [smem:[#allocation24_spill]] %s2032_s17  ;;  %s2050_s25 = sld [smem:[#allocation2 + $0x13]]  ;;  %v141_v34 = vstv %s2032_s17 }
  0x53   :  { %3022 = sst [smem:[#allocation25_spill]] %s2034_s18  ;;  %s2052_s2 = sld [smem:[#allocation2 + $0x93]]  ;;  %v157_v35 = vstv %s2034_s18 }
  0x54   :  { %3023 = sst [smem:[#allocation26_spill]] %s2036_s19  ;;  %s2054_s26 = sld [smem:[#allocation2 + $0x113]]  ;;  %v361_v39 = vstv %s2042_s21 }
  0x55   :  { %3024 = sst [smem:[#allocation27_spill]] %s2038_s20  ;;  %s2070_s12 = sld [smem:[#allocation2 + $0x14]]  ;;  %v385_v40 = vstv %s2044_s22 }
  0x56   :  { %310 = vrot.lane.b32.xlu1 %v1974_v14, %s1861_s27  ;;  %308 = vrot.lane.b32.xlu0 %v1954_v10, %s1861_s27  ;;  %3025 = sst [smem:[#allocation28_spill]] %s2042_s21  ;;  %s2056_s3 = sld [smem:[#allocation2 + $0x2]]  ;;  %v401_v41 = vstv %s2046_s23 }
  0x57   :  { %3026 = sst [smem:[#allocation29_spill]] %s2044_s22  ;;  %s2138_s11 = sld [smem:[#allocation2 + $0x16]]  ;;  %v417_v42 = vstv %s2048_s24 }
  0x58   :  { %3027 = sst [smem:[#allocation30_spill]] %s2046_s23  ;;  %s2072_s13 = sld [smem:[#allocation2 + $0x94]]  ;;  %v441_v43 = vstv %s2050_s25 }
  0x59   :  { %3028 = sst [smem:[#allocation31_spill]] %s2048_s24  ;;  %s2074_s4 = sld [smem:[#allocation2 + $0x114]]  ;;  %v457_v44 = vstv %s2052_s2 }
  0x5a   :  { %378 = vrot.lane.b32.xlu1 %v1960_v11, %s1861_s27  ;;  %376 = vrot.lane.b32.xlu0 %v1950_v9, %s1861_s27  ;;  %3029 = sst [smem:[#allocation32_spill]] %s2050_s25  ;;  %s2140_s14 = sld [smem:[#allocation2 + $0xe]] }
  0x5b   :  { %3030 = sst [smem:[#allocation33_spill]] %s2052_s2  ;;  %s2153_s15 = sld [smem:[#allocation2 + $0x96]] }
  0x5c   :  { %3031 = sst [smem:[#allocation34_spill]] %s2054_s26  ;;  %s2155_s10 = sld [smem:[#allocation2 + $0x116]] }
  0x5d   :  { %3032 = sst [smem:[#allocation35_spill]] %s2056_s3  ;;  %s2078_s3 = sld [smem:[#allocation2 + $0x3]]  ;;  %v877_v19 = vstv %s2138_s11 }
  0x5e   :  { %434 = vrot.lane.b32.xlu1 %v1970_v13, %s1861_s27  ;;  %432 = vrot.lane.b32.xlu0 %v1964_v12, %s1861_s27  ;;  %s1867_s27 = smov 111   ;;  %3038 = sst [smem:[#allocation41_spill]] %s2070_s12  ;;  %v2294_v63 = vmul.f32 %v877_v19, %v1946_v8 }
  0x5f   :  { %3039 = sst [smem:[#allocation42_spill]] %s2072_s13  ;;  %s2088_s12 = sld [smem:[#allocation2 + $0x10c]] }
  0x60   :  { %3040 = sst [smem:[#allocation43_spill]] %s2074_s4  ;;  %s2092_s4 = sld [smem:[#allocation2 + $0x15]] }
  0x61   :  { %s2094_s13 = sld [smem:[#allocation2 + $0x95]]  ;;  %3052 = sst [smem:[#allocation55_spill]] %s2140_s14  ;;  %v881_v23 = vstv %s2153_s15 }
  0x62   :  { %492 = vrot.lane.b32.xlu1 %v1974_v14, %s1862_s1  ;;  %490 = vrot.lane.b32.xlu0 %v1954_v10, %s1862_s1  ;;  %s2165_s0 = sld [smem:[#allocation2 + $0x8e]]  ;;  %s2173_s14 = sld [smem:[#allocation2 + $0x17]]  ;;  %v885_v4 = vstv %s2155_s10 }
  0x63   :  { %3041 = sst [smem:[#allocation44_spill]] %s2078_s3  ;;  %s2167_s8 = sld [smem:[#allocation2 + $0x10e]] }
  0x64   :  { %s2175_s17 = sld [smem:[#allocation2 + $0x97]]  ;;  %s2183_s20 = sld [smem:[#allocation2 + $0x6]] }
  0x65   :  { %3045 = sst [smem:[#allocation48_spill]] %s2088_s12  ;;  %s2104_s12 = sld [smem:[#allocation2 + $0x84]] }
  0x66   :  { %560 = vrot.lane.b32.xlu1 %v1960_v11, %s1862_s1  ;;  %558 = vrot.lane.b32.xlu0 %v1950_v9, %s1862_s1  ;;  %3046 = sst [smem:[#allocation49_spill]] %s2092_s4  ;;  %s2106_s4 = sld [smem:[#allocation2 + $0x104]] }
  0x67   :  { %3047 = sst [smem:[#allocation50_spill]] %s2094_s13  ;;  %s2108_s13 = sld [smem:[#allocation2 + $0x5]] }
  0x68   :  { %3054 = sst [smem:[#allocation56_spill]] %s2165_s0  ;;  %s2194_s2 = sld [smem:[#allocation2 + $0x86]] }
  0x69   :  { %3056 = sst [smem:[#allocation57_spill]] %s2167_s8  ;;  %s2196_s24 = sld [smem:[#allocation2 + $0x106]] }
  0x6a   :  { %616 = vrot.lane.b32.xlu1 %v1970_v13, %s1862_s1  ;;  %614 = vrot.lane.b32.xlu0 %v1964_v12, %s1862_s1  ;;  %s2060_s1 = sld [smem:[#allocation2 + $0x82]]  ;;  %s2202_s21 = sld [smem:[#allocation2 + $0xf]] }
  0x6b   :  { %s2204_s7 = sld [smem:[#allocation2 + $0x8f]]  ;;  %s2215_s18 = sld [smem:[#allocation2 + $0x18]]  ;;  %v857_v2 = vstv %s2104_s12 }
  0x6c   :  { %s2221_s19 = sld [smem:[#allocation2 + $0x98]]  ;;  %s2229_s3 = sld [smem:[#allocation2 + $0x7]]  ;;  %v2256_v18 = vmul.f32 %v857_v2, %v1942_v6 }
  0x6d   :  { %3049 = sst [smem:[#allocation52_spill]] %s2108_s13  ;;  %s2128_s13 = sld [smem:[#allocation2 + $0x8d]] }
  0x6e   :  { %674 = vrot.lane.b32.xlu1 %v1974_v14, %s1863_s28  ;;  %672 = vrot.lane.b32.xlu0 %v1954_v10, %s1863_s28  ;;  %s2223_s8 = sld [smem:[#allocation2 + $0x118]]  ;;  %s2231_s0 = sld [smem:[#allocation2 + $0x87]] }
  0x6f   :  { %s2242_s23 = sld [smem:[#allocation2 + $0x10]]  ;;  %s2263_s26 = sld [smem:[#allocation2 + $0x19]] }
  0x70   :  { %3033 = sst [smem:[#allocation36_spill]] %s2060_s1  ;;  %s2253_s6 = sld [smem:[#allocation2 + $0x110]] }
  0x71   :  { %s2080_s1 = sld [smem:[#allocation2 + $0x83]]  ;;  %s2265_s25 = sld [smem:[#allocation2 + $0x99]] }
  0x72   :  { %742 = vrot.lane.b32.xlu1 %v1960_v11, %s1863_s28  ;;  %740 = vrot.lane.b32.xlu0 %v1950_v9, %s1863_s28  ;;  %3071 = sst [smem:[#allocation59_spill]] %s2229_s3  ;;  %s2275_s11 = sld [smem:[#allocation2 + $0x8]] }
  0x73   :  { %s2289_s10 = sld [smem:[#allocation2 + $0x88]]  ;;  %s2303_s16 = sld [smem:[#allocation2 + $0x11]] }
  0x74   :  { %s2291_s15 = sld [smem:[#allocation2 + $0x108]]  ;;  %s2305_s22 = sld [smem:[#allocation2 + $0x91]] }
  0x75   :  { %3072 = sst [smem:[#allocation60_spill]] %s2242_s23  ;;  %s2311_s9 = sld [smem:[#allocation2 + $0x111]] }
  0x76   :  { %798 = vrot.lane.b32.xlu1 %v1970_v13, %s1863_s28  ;;  %796 = vrot.lane.b32.xlu0 %v1964_v12, %s1863_s28  ;;  %s2062_s28 = sld [smem:[#allocation2 + $0x102]]  ;;  %3077 = sst [smem:[#allocation62_spill]] %s2253_s6 }
  0x77   :  { %s2313_s12 = sld [smem:[#allocation2 + $0x1a]]  ;;  %s3102_s3 = sld [smem:[#allocation36_spill]] }
  0x7a   :  { %892 = vrot.lane.b32.xlu1 %v1974_v14, %s1864_s29  ;;  %890 = vrot.lane.b32.xlu0 %v1954_v10, %s1864_s29 }
  0x7c   :  { %3034 = sst [smem:[#allocation37_spill]] %s2062_s28  ;;  %s2082_s28 = sld [smem:[#allocation2 + $0x103]] }
  0x7d   :  { %s3105_s23 = sld [smem:[#allocation37_spill]] }
  0x7e   :  { %960 = vrot.lane.b32.xlu1 %v1960_v11, %s1864_s29  ;;  %958 = vrot.lane.b32.xlu0 %v1950_v9, %s1864_s29 }
  0x82   :  { %1016 = vrot.lane.b32.xlu1 %v1970_v13, %s1864_s29  ;;  %1014 = vrot.lane.b32.xlu0 %v1964_v12, %s1864_s29  ;;  %s2064_s29 = sld [smem:[#allocation2 + $0xb]]  ;;  %3042 = sst [smem:[#allocation45_spill]] %s2082_s28 }
  0x83   :  { %s2100_s28 = sld [smem:[#allocation2 + $0x4]] }
  0x86   :  { %1074 = vrot.lane.b32.xlu1 %v1974_v14, %s1865_s30  ;;  %1072 = vrot.lane.b32.xlu0 %v1954_v10, %s1865_s30 }
  0x88   :  { %3035 = sst [smem:[#allocation38_spill]] %s2064_s29  ;;  %s2084_s29 = sld [smem:[#allocation2 + $0xc]] }
  0x89   :  { %v853_v62 = vstv %s2100_s28  ;;  %s2240_s28 = sld [smem:[#allocation2 + $0x107]]  ;;  %s3109_s6 = sld [smem:[#allocation38_spill]] }
  0x8a   :  { %1142 = vrot.lane.b32.xlu1 %v1960_v11, %s1865_s30  ;;  %1140 = vrot.lane.b32.xlu0 %v1950_v9, %s1865_s30 }
  0x8e   :  { %1198 = vrot.lane.b32.xlu1 %v1970_v13, %s1865_s30  ;;  %1196 = vrot.lane.b32.xlu0 %v1964_v12, %s1865_s30  ;;  %s2066_s30 = sld [smem:[#allocation2 + $0x8b]]  ;;  %3043 = sst [smem:[#allocation46_spill]] %s2084_s29 }
  0x8f   :  { %s2098_s29 = sld [smem:[#allocation2 + $0x115]] }
  0x92   :  { %1256 = vrot.lane.b32.xlu1 %v1974_v14, %s1866_s5  ;;  %1254 = vrot.lane.b32.xlu0 %v1954_v10, %s1866_s5 }
  0x94   :  { %3036 = sst [smem:[#allocation39_spill]] %s2066_s30  ;;  %s2213_s30 = sld [smem:[#allocation2 + $0x10f]] }
  0x95   :  { %3048 = sst [smem:[#allocation51_spill]] %s2098_s29  ;;  %s2119_s29 = sld [smem:[#allocation2 + $0x105]] }
  0x96   :  { %1324 = vrot.lane.b32.xlu1 %v1960_v11, %s1866_s5  ;;  %1322 = vrot.lane.b32.xlu0 %v1950_v9, %s1866_s5 }
  0x9a   :  { %1380 = vrot.lane.b32.xlu1 %v1970_v13, %s1866_s5  ;;  %1378 = vrot.lane.b32.xlu0 %v1964_v12, %s1866_s5  ;;  %s2068_s5 = sld [smem:[#allocation2 + $0x10b]]  ;;  %3070 = sst [smem:[#allocation58_spill]] %s2213_s30 }
  0x9b   :  { %3051 = sst [smem:[#allocation54_spill]] %s2119_s29  ;;  %s2181_s29 = sld [smem:[#allocation2 + $0x117]] }
  0x9c   :  { %s2339_s30 = sld [smem:[#allocation2 + $0x9a]] }
  0x9e   :  { %1438 = vrot.lane.b32.xlu1 %v1974_v14, %s1867_s27  ;;  %1436 = vrot.lane.b32.xlu0 %v1954_v10, %s1867_s27  ;;  %v2238_v10 = vcombine.high %v2192_v50, %v2192_v50 }
  0xa0   :  { %3037 = sst [smem:[#allocation40_spill]] %s2068_s5  ;;  %s2086_s5 = sld [smem:[#allocation2 + $0x8c]] }
  0xa2   :  { %1506 = vrot.lane.b32.xlu1 %v1960_v11, %s1867_s27  ;;  %1504 = vrot.lane.b32.xlu0 %v1950_v9, %s1867_s27  ;;  %v861_v9 = vstv %s2106_s4  ;;  %v2246_v11 = vmul.f32 %v853_v62, %v1942_v6  ;;  %s2251_s4 = sld [smem:[#allocation2 + $0x90]] }
  0xa3   :  { %v2268_v62 = vmul.f32 %v861_v9, %v1942_v6 }
  0xa6   :  { %3044 = sst [smem:[#allocation47_spill]] %s2086_s5  ;;  %1562 = vrot.lane.b32.xlu1 %v1970_v13, %s1867_s27  ;;  %1560 = vrot.lane.b32.xlu0 %v1964_v12, %s1867_s27  ;;  %s2110_s5 = sld [smem:[#allocation2 + $0x85]]  ;;  %v869_v13 = vstv %s2128_s13 }
  0xa7   :  { %s2117_s27 = sld [smem:[#allocation2 + $0xd]]  ;;  %s3079_s13 = sld [smem:[#allocation56_spill]]  ;;  %v2281_v61 = vmul.f32 %v869_v13, %v1940_v5  ;;  %v2300_v13 = vmul.f32 %v885_v4, %v1946_v8 }
  0xa8   :  { %3076 = sst [smem:[#allocation61_spill]] %s2251_s4  ;;  %s2346_s4 = sld [smem:[#allocation2 + $0x11a]] }
  0xa9   :  { %3081 = sst [smem:[#allocation56_spill]] %s2275_s11  ;;  %s3101_s11 = sld [smem:[#allocation35_spill]] }
  0xac   :  { %3050 = sst [smem:[#allocation53_spill]] %s2110_s5  ;;  %s2130_s5 = sld [smem:[#allocation2 + $0x10d]] }
  0xad   :  { %v865_v12 = vstv %s2117_s27  ;;  %s2273_s27 = sld [smem:[#allocation2 + $0x119]] }
  0xae   :  { %v2278_v2 = vmul.f32 %v865_v12, %v1940_v5  ;;  %v2297_v12 = vmul.f32 %v881_v23, %v1946_v8 }
  0xb2   :  { %v873_v14 = vstv %s2130_s5  ;;  %s3080_s5 = sld [smem:[#allocation57_spill]] }
  0xb3   :  { %v2284_v6 = vmul.f32 %v873_v14, %v1940_v5  ;;  %v2317_v5 = vcombine.high %v2261_v3, %v2261_v3  ;;  %3082 = sst [smem:[#allocation57_spill]] %s2339_s30  ;;  %s3100_s30 = sld [smem:[#allocation34_spill]] }
  0xbc   :  { %v184_v8 = vpop.permute.xlu1 %183  ;;  %v103_v4 = vpop.permute.xlu0 %102 }
  0xc0   :  { %v186_v59 = vpop.permute.xlu1 %185  ;;  %v251_v58 = vpop.permute.xlu0 %250 }
  0xc1   :  { %v187_v23 = vsel %vm108_vm0, %v184_v8, %v186_v59  ;;  %v188_v9 = vsel %vm108_vm0, %v186_v59, %v184_v8 }
  0xc2   :  { %v189_v14 = vmul.f32 %v2090_v15, %v188_v9  ;;  %v190_v1 = vmul.f32 %v187_v23, %v2123_v20 }
  0xc4   :  { %v193_v47 = vmul.f32 %v192_v21, %v189_v14  ;;  %v194_v59 = vmul.f32 %v192_v21, %v190_v1  ;;  %v209_v8 = vmul.f32 %v208_v22, %v189_v14  ;;  %v210_v54 = vmul.f32 %v208_v22, %v190_v1  ;;  %v253_v45 = vpop.permute.xlu1 %252  ;;  %v105_v9 = vpop.permute.xlu0 %104 }
  0xc5   :  { %v225_v23 = vmul.f32 %v224_v24, %v189_v14  ;;  %v226_v52 = vmul.f32 %v224_v24, %v190_v1  ;;  %v254_v48 = vsel %vm108_vm0, %v251_v58, %v253_v45  ;;  %v255_v21 = vsel %vm108_vm0, %v253_v45, %v251_v58 }
  0xc6   :  { %v197_v49 = vcombine.low %v193_v47, %v194_v59  ;;  %v213_v51 = vcombine.low %v209_v8, %v210_v54  ;;  %v256_v22 = vmul.f32 %v2090_v15, %v255_v21  ;;  %v257_v19 = vmul.f32 %v254_v48, %v2123_v20 }
  0xc7   :  { %v229_v14 = vcombine.low %v225_v23, %v226_v52  ;;  %v109_v24 = vsel %vm108_vm0, %v103_v4, %v105_v9  ;;  %v110_v1 = vsel %vm108_vm0, %v105_v9, %v103_v4 }
  0xc8   :  { %v204_v45 = vrot.slane %v197_v49, %v1944_v7  ;;  %v260_v47 = vmul.f32 %v259_v25, %v256_v22  ;;  %v261_v54 = vmul.f32 %v259_v25, %v257_v19  ;;  %v311_v58 = vpop.permute.xlu1 %310  ;;  %v309_v59 = vpop.permute.xlu0 %308  ;;  %v220_v48 = vrot.slane %v213_v51, %v1944_v7 }
  0xc9   :  { %v276_v52 = vmul.f32 %v275_v26, %v256_v22  ;;  %v277_v23 = vmul.f32 %v275_v26, %v257_v19  ;;  %v292_v4 = vmul.f32 %v291_v27, %v256_v22  ;;  %v293_v49 = vmul.f32 %v291_v27, %v257_v19 }
  0xca   :  { %v264_v9 = vcombine.low %v260_v47, %v261_v54  ;;  %v122_v25 = vmul.f32 %v2090_v15, %v110_v1  ;;  %v123_v21 = vmul.f32 %v2123_v20, %v109_v24  ;;  %v236_v8 = vrot.slane %v229_v14, %v1944_v7 }
  0xcb   :  { %v280_v51 = vcombine.low %v276_v52, %v277_v23  ;;  %v313_v56 = vsel %vm312_vm1, %v309_v59, %v311_v58  ;;  %v314_v26 = vsel %vm312_vm1, %v311_v58, %v309_v59  ;;  %v296_v47 = vcombine.low %v292_v4, %v293_v49 }
  0xcc   :  { %v271_v22 = vrot.slane %v264_v9, %v1944_v7  ;;  %v126_v27 = vmul.f32 %v125_v30, %v122_v25  ;;  %v127_v19 = vmul.f32 %v125_v30, %v123_v21  ;;  %v379_v15 = vpop.permute.xlu1 %378  ;;  %v377_v20 = vpop.permute.xlu0 %376  ;;  %v142_v24 = vmul.f32 %v141_v34, %v122_v25 }
  0xcd   :  { %v287_v14 = vrot.slane %v280_v51, %v1944_v7  ;;  %v143_v1 = vmul.f32 %v141_v34, %v123_v21  ;;  %v158_v54 = vmul.f32 %v157_v35, %v122_v25  ;;  %v303_v58 = vrot.slane %v296_v47, %v1944_v7 }
  0xce   :  { %v130_v59 = vcombine.low %v126_v27, %v127_v19  ;;  %v159_v52 = vmul.f32 %v157_v35, %v123_v21  ;;  %v326_v30 = vmul.f32 %v2102_v16, %v314_v26  ;;  %v327_v4 = vmul.f32 %v2151_v32, %v313_v56 }
  0xcf   :  { %v146_v23 = vcombine.low %v142_v24, %v143_v1  ;;  %v380_v9 = vsel %vm312_vm1, %v377_v20, %v379_v15  ;;  %v381_v34 = vsel %vm312_vm1, %v379_v15, %v377_v20 }
  0xd0   :  { %v137_v49 = vrot.slane %v130_v59, %v1944_v7  ;;  %v162_v25 = vcombine.low %v158_v54, %v159_v52  ;;  %v330_v51 = vmul.f32 %v329_v36, %v326_v30  ;;  %v346_v35 = vmul.f32 %v345_v38, %v326_v30  ;;  %v435_v21 = vpop.permute.xlu1 %434  ;;  %v433_v47 = vpop.permute.xlu0 %432 }
  0xd1   :  { %v153_v56 = vrot.slane %v146_v23, %v1944_v7  ;;  %v331_v26 = vmul.f32 %v329_v36, %v327_v4  ;;  %v347_v27 = vmul.f32 %v345_v38, %v327_v4  ;;  %v362_v19 = vmul.f32 %v361_v39, %v326_v30 }
  0xd2   :  { %v139_v15 = vadd.f32 %v137_v49, %v2147_v31  ;;  %v169_v20 = vrot.slane %v162_v25, %v1944_v7  ;;  %v363_v24 = vmul.f32 %v361_v39, %v327_v4  ;;  %v382_v1 = vmul.f32 %v2102_v16, %v381_v34 }
  0xd3   :  { %v155_v54 = vadd.f32 %v153_v56, %v2143_v29  ;;  %v334_v59 = vcombine.low %v330_v51, %v331_v26  ;;  %v350_v52 = vcombine.low %v346_v35, %v347_v27  ;;  %v383_v36 = vmul.f32 %v380_v9, %v2151_v32 }
  0xd4   :  { %v171_v38 = vadd.f32 %v169_v20, %v2158_v33  ;;  %v206_v30 = vadd.f32 %v204_v45, %v139_v15  ;;  %v366_v31 = vcombine.low %v362_v19, %v363_v24  ;;  %v386_v23 = vmul.f32 %v385_v40, %v382_v1  ;;  %v493_v49 = vpop.permute.xlu1 %492  ;;  %v491_v39 = vpop.permute.xlu0 %490 }
  0xd5   :  { %v222_v4 = vadd.f32 %v220_v48, %v155_v54  ;;  %v341_v34 = vrot.slane %v334_v59, %v1944_v7  ;;  %v357_v29 = vrot.slane %v350_v52, %v1944_v7  ;;  %v387_v25 = vmul.f32 %v385_v40, %v383_v36 }
  0xd6   :  { %v238_v51 = vadd.f32 %v236_v8, %v171_v38  ;;  %v273_v9 = vadd.f32 %v271_v22, %v206_v30  ;;  %v373_v33 = vrot.slane %v366_v31, %v1944_v7  ;;  %v402_v45 = vmul.f32 %v401_v41, %v382_v1 }
  0xd7   :  { %v289_v35 = vadd.f32 %v287_v14, %v222_v4  ;;  %v390_v56 = vcombine.low %v386_v23, %v387_v25  ;;  %v403_v26 = vmul.f32 %v401_v41, %v383_v36  ;;  %v418_v27 = vmul.f32 %v417_v42, %v382_v1 }
  0xd8   :  { %v305_v19 = vadd.f32 %v303_v58, %v238_v51  ;;  %v343_v48 = vadd.f32 %v341_v34, %v273_v9  ;;  %v419_v15 = vmul.f32 %v417_v42, %v383_v36  ;;  %v436_v20 = vsel %vm312_vm1, %v433_v47, %v435_v21  ;;  %v561_v40 = vpop.permute.xlu1 %560  ;;  %v559_v8 = vpop.permute.xlu0 %558 }
  0xd9   :  { %v359_v22 = vadd.f32 %v357_v29, %v289_v35  ;;  %v397_v14 = vrot.slane %v390_v56, %v1944_v7  ;;  %v406_v24 = vcombine.low %v402_v45, %v403_v26  ;;  %v437_v41 = vsel %vm312_vm1, %v435_v21, %v433_v47 }
  0xda   :  { %v375_v58 = vadd.f32 %v373_v33, %v305_v19  ;;  %v422_v1 = vcombine.low %v418_v27, %v419_v15  ;;  %v438_v42 = vmul.f32 %v2102_v16, %v437_v41  ;;  %v439_v54 = vmul.f32 %v436_v20, %v2151_v32 }
  0xdb   :  { %v399_v59 = vadd.f32 %v397_v14, %v343_v48  ;;  %v413_v52 = vrot.slane %v406_v24, %v1944_v7  ;;  %v495_v36 = vsel %vm494_vm2, %v491_v39, %v493_v49  ;;  %v496_v38 = vsel %vm494_vm2, %v493_v49, %v491_v39 }
  0xdc   :  { %v429_v21 = vrot.slane %v422_v1, %v1944_v7  ;;  %v442_v47 = vmul.f32 %v441_v43, %v438_v42  ;;  %v443_v30 = vmul.f32 %v441_v43, %v439_v54  ;;  %v458_v31 = vmul.f32 %v457_v44, %v438_v42  ;;  %v617_v16 = vpop.permute.xlu1 %616  ;;  %v615_v32 = vpop.permute.xlu0 %614 }
  0xdd   :  { %v415_v23 = vadd.f32 %v413_v52, %v359_v22  ;;  %v459_v4 = vmul.f32 %v457_v44, %v439_v54  ;;  %v3103_v34 = vstv %s3100_s30  ;;  %v508_v9 = vmul.f32 %v2136_v28, %v496_v38  ;;  %s3110_s30 = sld [smem:[#allocation39_spill]] }
  0xde   :  { %v474_v29 = vmul.f32 %v3103_v34, %v438_v42  ;;  %v3104_v25 = vmov %v3103_v34  ;;  %v431_v39 = vadd.f32 %v429_v21, %v375_v58  ;;  %v446_v51 = vcombine.low %v442_v47, %v443_v30 }
  0xdf   :  { %v475_v49 = vmul.f32 %v3104_v25, %v439_v54  ;;  %v509_v43 = vmul.f32 %v2187_v46, %v495_v36  ;;  %v462_v33 = vcombine.low %v458_v31, %v459_v4  ;;  %v562_v44 = vsel %vm494_vm2, %v559_v8, %v561_v40 }
  0xe0   :  { %v563_v35 = vsel %vm494_vm2, %v561_v40, %v559_v8  ;;  %v453_v56 = vrot.slane %v446_v51, %v1944_v7  ;;  %v3106_v26 = vstv %s3101_s11  ;;  %v3108_v15 = vstv %s3102_s3  ;;  %v675_v22 = vpop.permute.xlu1 %674  ;;  %v673_v14 = vpop.permute.xlu0 %672  ;;  %s3114_s11 = sld [smem:[#allocation40_spill]]  ;;  %s3121_s3 = sld [smem:[#allocation41_spill]] }
  0xe1   :  { %v478_v45 = vcombine.low %v474_v29, %v475_v49  ;;  %v512_v27 = vmul.f32 %v3106_v26, %v508_v9  ;;  %v3107_v19 = vmov %v3106_v26  ;;  %v528_v20 = vmul.f32 %v3108_v15, %v508_v9 }
  0xe2   :  { %v513_v48 = vmul.f32 %v3107_v19, %v509_v43  ;;  %v469_v24 = vrot.slane %v462_v33, %v1944_v7  ;;  %v3111_v58 = vmov %v3108_v15  ;;  %v3112_v42 = vstv %s3105_s23  ;;  %s3122_s23 = sld [smem:[#allocation42_spill]] }
  0xe3   :  { %v485_v41 = vrot.slane %v478_v45, %v1944_v7  ;;  %v529_v1 = vmul.f32 %v3111_v58, %v509_v43  ;;  %v544_v40 = vmul.f32 %v3112_v42, %v508_v9  ;;  %v455_v8 = vadd.f32 %v453_v56, %v399_v59 }
  0xe4   :  { %v516_v54 = vcombine.low %v512_v27, %v513_v48  ;;  %v3113_v52 = vmov %v3112_v42  ;;  %v564_v38 = vmul.f32 %v2136_v28, %v563_v35  ;;  %v471_v21 = vadd.f32 %v469_v24, %v415_v23  ;;  %v743_v51 = vpop.permute.xlu1 %742  ;;  %v741_v9 = vpop.permute.xlu0 %740 }
  0xe5   :  { %v545_v36 = vmul.f32 %v3113_v52, %v509_v43  ;;  %v487_v47 = vadd.f32 %v485_v41, %v431_v39  ;;  %v532_v30 = vcombine.low %v528_v20, %v529_v1  ;;  %v565_v31 = vmul.f32 %v562_v44, %v2187_v46 }
  0xe6   :  { %v523_v4 = vrot.slane %v516_v54, %v1944_v7  ;;  %v3115_v29 = vstv %s3109_s6  ;;  %v3116_v49 = vstv %s3110_s30  ;;  %v3119_v56 = vstv %s3114_s11  ;;  %s3123_s6 = sld [smem:[#allocation43_spill]]  ;;  %s3128_s30 = sld [smem:[#allocation44_spill]] }
  0xe7   :  { %v548_v34 = vcombine.low %v544_v40, %v545_v36  ;;  %v568_v25 = vmul.f32 %v3115_v29, %v564_v38  ;;  %v584_v59 = vmul.f32 %v3116_v49, %v564_v38  ;;  %v539_v33 = vrot.slane %v532_v30, %v1944_v7  ;;  %s3131_s11 = sld [smem:[#allocation45_spill]] }
  0xe8   :  { %v3117_v43 = vmov %v3115_v29  ;;  %v3118_v35 = vmov %v3116_v49  ;;  %v600_v39 = vmul.f32 %v3119_v56, %v564_v38  ;;  %v525_v26 = vadd.f32 %v523_v4, %v455_v8  ;;  %v2537_v8 = vpop.permute.xlu1 %798  ;;  %v2539_v54 = vpop.permute.xlu0 %796 }
  0xe9   :  { %v569_v45 = vmul.f32 %v3117_v43, %v565_v31  ;;  %v585_v23 = vmul.f32 %v3118_v35, %v565_v31  ;;  %v555_v44 = vrot.slane %v548_v34, %v1944_v7  ;;  %v3120_v27 = vmov %v3119_v56 }
  0xea   :  { %v601_v19 = vmul.f32 %v3120_v27, %v565_v31  ;;  %v618_v48 = vsel %vm494_vm2, %v615_v32, %v617_v16  ;;  %v541_v15 = vadd.f32 %v539_v33, %v471_v21  ;;  %v619_v41 = vsel %vm494_vm2, %v617_v16, %v615_v32 }
  0xeb   :  { %v572_v20 = vcombine.low %v568_v25, %v569_v45  ;;  %v588_v24 = vcombine.low %v584_v59, %v585_v23  ;;  %v557_v58 = vadd.f32 %v555_v44, %v487_v47  ;;  %v620_v42 = vmul.f32 %v2136_v28, %v619_v41 }
  0xec   :  { %v604_v1 = vcombine.low %v600_v39, %v601_v19  ;;  %v621_v40 = vmul.f32 %v618_v48, %v2187_v46  ;;  %v677_v16 = vsel %vm676_vm3, %v673_v14, %v675_v22  ;;  %v678_v32 = vsel %vm676_vm3, %v675_v22, %v673_v14  ;;  %v2561_v35 = vpop.permute.xlu1 %892  ;;  %v891_v23 = vpop.permute.xlu0 %890 }
  0xed   :  { %v579_v52 = vrot.slane %v572_v20, %v1944_v7  ;;  %v595_v36 = vrot.slane %v588_v24, %v1944_v7  ;;  %v3124_v28 = vstv %s3121_s3  ;;  %v3126_v30 = vstv %s3122_s23  ;;  %s3135_s3 = sld [smem:[#allocation46_spill]]  ;;  %s3137_s23 = sld [smem:[#allocation47_spill]] }
  0xee   :  { %v611_v38 = vrot.slane %v604_v1, %v1944_v7  ;;  %v624_v21 = vmul.f32 %v3124_v28, %v620_v42  ;;  %v3125_v46 = vmov %v3124_v28  ;;  %v640_v31 = vmul.f32 %v3126_v30, %v620_v42 }
  0xef   :  { %v625_v47 = vmul.f32 %v3125_v46, %v621_v40  ;;  %v581_v4 = vadd.f32 %v579_v52, %v525_v26  ;;  %v597_v34 = vadd.f32 %v595_v36, %v541_v15  ;;  %v3127_v29 = vmov %v3126_v30 }
  0xf0   :  { %v641_v25 = vmul.f32 %v3127_v29, %v621_v40  ;;  %v3129_v49 = vstv %s3123_s6  ;;  %v613_v33 = vadd.f32 %v611_v38, %v557_v58  ;;  %v690_v45 = vmul.f32 %v2163_v37, %v678_v32  ;;  %s3140_s6 = sld [smem:[#allocation48_spill]]  ;;  %v961_v28 = vpop.permute.xlu1 %960 }
  0xf1   :  { %v656_v59 = vmul.f32 %v3129_v49, %v620_v42  ;;  %v628_v43 = vcombine.low %v624_v21, %v625_v47  ;;  %v3130_v22 = vmov %v3129_v49  ;;  %v691_v39 = vmul.f32 %v2210_v57, %v677_v16  ;;  %v959_v21 = vpop.permute.xlu0 %958 }
  0xf2   :  { %v657_v14 = vmul.f32 %v3130_v22, %v621_v40  ;;  %v644_v56 = vcombine.low %v640_v31, %v641_v25  ;;  %v744_v26 = vsel %vm676_vm3, %v741_v9, %v743_v51  ;;  %v745_v44 = vsel %vm676_vm3, %v743_v51, %v741_v9 }
  0xf3   :  { %v635_v27 = vrot.slane %v628_v43, %v1944_v7  ;;  %v3132_v48 = vstv %s3128_s30  ;;  %v3133_v20 = vstv %s2080_s1  ;;  %v3138_v52 = vstv %s3131_s11  ;;  %s3147_s1 = sld [smem:[#allocation49_spill]]  ;;  %s3148_s30 = sld [smem:[#allocation50_spill]] }
  0xf4   :  { %v660_v19 = vcombine.low %v656_v59, %v657_v14  ;;  %v694_v15 = vmul.f32 %v3132_v48, %v690_v45  ;;  %v710_v24 = vmul.f32 %v3133_v20, %v690_v45  ;;  %v651_v41 = vrot.slane %v644_v56, %v1944_v7  ;;  %s3149_s11 = sld [smem:[#allocation51_spill]] }
  0xf5   :  { %v3134_v58 = vmov %v3132_v48  ;;  %v3136_v42 = vmov %v3133_v20  ;;  %v726_v36 = vmul.f32 %v3138_v52, %v690_v45  ;;  %v637_v16 = vadd.f32 %v635_v27, %v581_v4  ;;  %v2607_v20 = vpop.permute.xlu0 %1014 }
  0xf6   :  { %v695_v1 = vmul.f32 %v3134_v58, %v691_v39  ;;  %v711_v40 = vmul.f32 %v3136_v42, %v691_v39  ;;  %v667_v51 = vrot.slane %v660_v19, %v1944_v7  ;;  %v3139_v9 = vmov %v3138_v52 }
  0xf7   :  { %v727_v32 = vmul.f32 %v3139_v9, %v691_v39  ;;  %v746_v38 = vmul.f32 %v2163_v37, %v745_v44  ;;  %v653_v46 = vadd.f32 %v651_v41, %v597_v34  ;;  %v747_v31 = vmul.f32 %v744_v26, %v2210_v57 }
  0xf8   :  { %v698_v47 = vcombine.low %v694_v15, %v695_v1  ;;  %v714_v30 = vcombine.low %v710_v24, %v711_v40  ;;  %v669_v29 = vadd.f32 %v667_v51, %v613_v33  ;;  %v3141_v4 = vstv %s3135_s3  ;;  %v2605_v15 = vpop.permute.xlu1 %1016  ;;  %s3153_s3 = sld [smem:[#allocation52_spill]] }
  0xf9   :  { %v730_v25 = vcombine.low %v726_v36, %v727_v32  ;;  %v750_v49 = vmul.f32 %v3141_v4, %v746_v38  ;;  %v3142_v59 = vstv %s3137_s23  ;;  %v3143_v45 = vmov %v3141_v4  ;;  %s3154_s23 = sld [smem:[#allocation53_spill]] }
  0xfa   :  { %v766_v43 = vmul.f32 %v3142_v59, %v746_v38  ;;  %v705_v22 = vrot.slane %v698_v47, %v1944_v7  ;;  %v721_v14 = vrot.slane %v714_v30, %v1944_v7  ;;  %v751_v56 = vmul.f32 %v3143_v45, %v747_v31 }
  0xfb   :  { %v3144_v39 = vmov %v3142_v59  ;;  %v737_v34 = vrot.slane %v730_v25, %v1944_v7  ;;  %v3145_v27 = vstv %s3140_s6  ;;  %v800_v33 = vsel %vm676_vm3, %v2539_v54, %v2537_v8  ;;  %s3156_s6 = sld [smem:[#allocation54_spill]] }
  0xfc   :  { %v767_v44 = vmul.f32 %v3144_v39, %v747_v31  ;;  %v782_v19 = vmul.f32 %v3145_v27, %v746_v38  ;;  %v3146_v48 = vmov %v3145_v27  ;;  %v707_v24 = vadd.f32 %v705_v22, %v637_v16  ;;  %v2631_v59 = vpop.permute.xlu1 %1074 }
  0xfd   :  { %v783_v26 = vmul.f32 %v3146_v48, %v747_v31  ;;  %v723_v41 = vadd.f32 %v721_v14, %v653_v46  ;;  %v754_v58 = vcombine.low %v750_v49, %v751_v56  ;;  %v739_v42 = vadd.f32 %v737_v34, %v669_v29 }
  0xfe   :  { %v770_v1 = vcombine.low %v766_v43, %v767_v44  ;;  %v801_v52 = vsel %vm676_vm3, %v2537_v8, %v2539_v54  ;;  %v803_v36 = vmul.f32 %v800_v33, %v2210_v57  ;;  %v895_v32 = vsel %vm894_vm4, %v891_v23, %v2561_v35  ;;  %v2633_v43 = vpop.permute.xlu0 %1072 }
  0xff   :  { %v786_v40 = vcombine.low %v782_v19, %v783_v26  ;;  %v761_v51 = vrot.slane %v754_v58, %v1944_v7  ;;  %v802_v16 = vmul.f32 %v2163_v37, %v801_v52  ;;  %v3150_v46 = vstv %s3147_s1  ;;  %s3164_s1 = sld [smem:[#allocation55_spill]] }
 0x100   :  { %v777_v9 = vrot.slane %v770_v1, %v1944_v7  ;;  %v807_v47 = vmul.f32 %v3150_v46, %v803_v36  ;;  %v3151_v30 = vstv %s3148_s30  ;;  %v3152_v8 = vstv %s3149_s11 }
 0x101   :  { %v793_v38 = vrot.slane %v786_v40, %v1944_v7  ;;  %v823_v31 = vmul.f32 %v3151_v30, %v803_v36  ;;  %v839_v54 = vmul.f32 %v3152_v8, %v803_v36  ;;  %v763_v57 = vadd.f32 %v761_v51, %v707_v24 }
 0x102   :  { %v779_v29 = vadd.f32 %v777_v9, %v723_v41  ;;  %v3155_v25 = vmov %v3150_v46  ;;  %v3157_v37 = vmov %v3151_v30  ;;  %v3158_v14 = vmov %v3152_v8  ;;  %v1143_v8 = vpop.permute.xlu1 %1142 }
 0x103   :  { %v806_v4 = vmul.f32 %v3155_v25, %v802_v16  ;;  %v822_v49 = vmul.f32 %v3157_v37, %v802_v16  ;;  %v795_v22 = vadd.f32 %v793_v38, %v739_v42  ;;  %v838_v45 = vmul.f32 %v3158_v14, %v802_v16 }
 0x104   :  { %v896_v56 = vsel %vm894_vm4, %v2561_v35, %v891_v23  ;;  %v908_v39 = vmul.f32 %v2192_v50, %v895_v32  ;;  %v962_v19 = vsel %vm894_vm4, %v959_v21, %v961_v28  ;;  %v3159_v26 = vstv %s3153_s3 }
 0x105   :  { %v810_v44 = vcombine.low %v806_v4, %v807_v47  ;;  %v826_v34 = vcombine.low %v822_v49, %v823_v31  ;;  %v909_v27 = vmul.f32 %v2238_v10, %v896_v56  ;;  %v842_v48 = vcombine.low %v838_v45, %v839_v54  ;;  %v1141_v54 = vpop.permute.xlu0 %1140 }
 0x106   :  { %v912_v33 = vmul.f32 %v3159_v26, %v908_v39  ;;  %v3160_v24 = vstv %s3154_s23  ;;  %v3161_v58 = vstv %s3156_s6  ;;  %v3162_v23 = vmov %v3159_v26 }
 0x107   :  { %v928_v41 = vmul.f32 %v3160_v24, %v908_v39  ;;  %v944_v1 = vmul.f32 %v3161_v58, %v908_v39  ;;  %v817_v42 = vrot.slane %v810_v44, %v1944_v7  ;;  %v833_v35 = vrot.slane %v826_v34, %v1944_v7 }
 0x108   :  { %v913_v40 = vmul.f32 %v3162_v23, %v909_v27  ;;  %v3163_v52 = vmov %v3160_v24  ;;  %v849_v51 = vrot.slane %v842_v48, %v1944_v7  ;;  %v3165_v9 = vmov %v3161_v58 }
 0x109   :  { %v929_v36 = vmul.f32 %v3163_v52, %v909_v27  ;;  %v945_v16 = vmul.f32 %v3165_v9, %v909_v27  ;;  %v963_v32 = vsel %vm894_vm4, %v961_v28, %v959_v21  ;;  %v964_v38 = vmul.f32 %v2192_v50, %v962_v19 }
 0x10a   :  { %v819_v46 = vadd.f32 %v817_v42, %v763_v57  ;;  %v835_v47 = vadd.f32 %v833_v35, %v779_v29  ;;  %v916_v30 = vcombine.low %v912_v33, %v913_v40  ;;  %v851_v25 = vadd.f32 %v849_v51, %v795_v22  ;;  %v2695_v42 = vpop.permute.xlu1 %1198  ;;  %v1197_v35 = vpop.permute.xlu0 %1196 }
 0x10b   :  { %v932_v31 = vcombine.low %v928_v41, %v929_v36  ;;  %v948_v4 = vcombine.low %v944_v1, %v945_v16  ;;  %v965_v37 = vmul.f32 %v963_v32, %v2238_v10  ;;  %v3166_v49 = vstv %s3164_s1 }
 0x10c   :  { %v968_v28 = vmul.f32 %v3166_v49, %v964_v38  ;;  %v855_v21 = vadd.f32 %v2246_v11, %v819_v46  ;;  %v859_v57 = vadd.f32 %v2256_v18, %v835_v47  ;;  %v923_v29 = vrot.slane %v916_v30, %v1944_v7 }
 0x10d   :  { %v939_v14 = vrot.slane %v932_v31, %v1944_v7  ;;  %v863_v45 = vadd.f32 %v2268_v62, %v851_v25  ;;  %v955_v56 = vrot.slane %v948_v4, %v1944_v7  ;;  %v3167_v39 = vmov %v3166_v49 }
 0x10e   :  { %v969_v22 = vmul.f32 %v3167_v39, %v965_v37  ;;  %v3168_v44 = vstv %s3079_s13  ;;  %v871_v27 = vadd.f32 %v2281_v61, %v859_v57  ;;  %v867_v19 = vadd.f32 %v2278_v2, %v855_v21  ;;  %v1255_v39 = vpop.permute.xlu0 %1254 }
 0x10f   :  { %v984_v34 = vmul.f32 %v3168_v44, %v964_v38  ;;  %v3169_v48 = vmov %v3168_v44  ;;  %v3170_v26 = vstv %s3080_s5  ;;  %v875_v33 = vadd.f32 %v2284_v6, %v863_v45 }
 0x110   :  { %v985_v11 = vmul.f32 %v3169_v48, %v965_v37  ;;  %v1000_v18 = vmul.f32 %v3170_v26, %v964_v38  ;;  %v972_v24 = vcombine.low %v968_v28, %v969_v22  ;;  %v3171_v41 = vmov %v3170_v26 }
 0x111   :  { %v1001_v58 = vmul.f32 %v3171_v41, %v965_v37  ;;  %v1018_v62 = vsel %vm894_vm4, %v2607_v20, %v2605_v15  ;;  %v883_v1 = vadd.f32 %v2297_v12, %v871_v27  ;;  %v879_v61 = vadd.f32 %v2294_v63, %v867_v19 }
 0x112   :  { %v988_v2 = vcombine.low %v984_v34, %v985_v11  ;;  %v1019_v6 = vsel %vm894_vm4, %v2605_v15, %v2607_v20  ;;  %v887_v23 = vadd.f32 %v2300_v13, %v875_v33  ;;  %v979_v40 = vrot.slane %v972_v24, %v1944_v7 }
 0x113   :  { %v1004_v12 = vcombine.low %v1000_v18, %v1001_v58  ;;  %v1020_v63 = vmul.f32 %v2192_v50, %v1018_v62  ;;  %v925_v52 = vadd.f32 %v923_v29, %v879_v61  ;;  %v941_v36 = vadd.f32 %v939_v14, %v883_v1 }
 0x114   :  { %v995_v51 = vrot.slane %v988_v2, %v1944_v7  ;;  %v1021_v15 = vmul.f32 %v1019_v6, %v2238_v10  ;;  %v957_v20 = vadd.f32 %v955_v56, %v887_v23  ;;  %v3172_v16 = vstv %s2173_s14  ;;  %v1257_v56 = vpop.permute.xlu1 %1256 }
 0x115   :  { %v1011_v9 = vrot.slane %v1004_v12, %v1944_v7  ;;  %v1024_v32 = vmul.f32 %v3172_v16, %v1020_v63  ;;  %v3173_v38 = vstv %s2175_s17  ;;  %v981_v46 = vadd.f32 %v979_v40, %v925_v52  ;;  %s3180_s17 = sld [smem:[#allocation58_spill]] }
 0x116   :  { %v1040_v13 = vmul.f32 %v3173_v38, %v1020_v63  ;;  %v997_v47 = vadd.f32 %v995_v51, %v941_v36  ;;  %v3174_v30 = vmov %v3172_v16  ;;  %v3175_v25 = vmov %v3173_v38  ;;  %v1323_v38 = vpop.permute.xlu0 %1322 }
 0x117   :  { %v1025_v31 = vmul.f32 %v3174_v30, %v1021_v15  ;;  %v1041_v4 = vmul.f32 %v3175_v25, %v1021_v15  ;;  %v1013_v50 = vadd.f32 %v1011_v9, %v957_v20  ;;  %v3176_v37 = vstv %s2181_s29 }
 0x118   :  { %v1056_v49 = vmul.f32 %v3176_v37, %v1020_v63  ;;  %v3177_v28 = vmov %v3176_v37  ;;  %v1077_v10 = vsel %vm1076_vm5, %v2633_v43, %v2631_v59  ;;  %v1078_v14 = vsel %vm1076_vm5, %v2631_v59, %v2633_v43 }
 0x119   :  { %v1057_v21 = vmul.f32 %v3177_v28, %v1021_v15  ;;  %v1028_v57 = vcombine.low %v1024_v32, %v1025_v31  ;;  %v1044_v29 = vcombine.low %v1040_v13, %v1041_v4  ;;  %v1090_v45 = vmul.f32 %v2261_v3, %v1077_v10  ;;  %v1325_v32 = vpop.permute.xlu1 %1324 }
 0x11a   :  { %v1091_v44 = vmul.f32 %v2317_v5, %v1078_v14  ;;  %v1144_v34 = vsel %vm1076_vm5, %v1141_v54, %v1143_v8  ;;  %v1145_v27 = vsel %vm1076_vm5, %v1143_v8, %v1141_v54  ;;  %v3178_v43 = vstv %s2183_s20  ;;  %s3229_s20 = sld [smem:[#allocation57_spill]] }
 0x11b   :  { %v1060_v22 = vcombine.low %v1056_v49, %v1057_v21  ;;  %v1035_v19 = vrot.slane %v1028_v57, %v1944_v7  ;;  %v1051_v59 = vrot.slane %v1044_v29, %v1944_v7  ;;  %v1094_v48 = vmul.f32 %v3178_v43, %v1090_v45 }
 0x11c   :  { %v3179_v11 = vstv %s2194_s2  ;;  %v3181_v33 = vmov %v3178_v43  ;;  %v3183_v62 = vstv %s2196_s24  ;;  %v1146_v6 = vmul.f32 %v2261_v3, %v1144_v34 }
 0x11d   :  { %v1110_v26 = vmul.f32 %v3179_v11, %v1090_v45  ;;  %v1067_v18 = vrot.slane %v1060_v22, %v1944_v7  ;;  %v1095_v24 = vmul.f32 %v3181_v33, %v1091_v44  ;;  %v3182_v41 = vmov %v3179_v11 }
 0x11e   :  { %v1111_v58 = vmul.f32 %v3182_v41, %v1091_v44  ;;  %v1126_v1 = vmul.f32 %v3183_v62, %v1090_v45  ;;  %v1037_v8 = vadd.f32 %v1035_v19, %v981_v46  ;;  %v1053_v54 = vadd.f32 %v1051_v59, %v997_v47 }
 0x11f   :  { %v3184_v61 = vmov %v3183_v62  ;;  %v1069_v23 = vadd.f32 %v1067_v18, %v1013_v50  ;;  %v1098_v40 = vcombine.low %v1094_v48, %v1095_v24  ;;  %v1147_v63 = vmul.f32 %v1145_v27, %v2317_v5  ;;  %v1379_v18 = vpop.permute.xlu0 %1378 }
 0x120   :  { %v1127_v2 = vmul.f32 %v3184_v61, %v1091_v44  ;;  %v1114_v12 = vcombine.low %v1110_v26, %v1111_v58  ;;  %v3185_v36 = vstv %s2202_s21  ;;  %v3186_v15 = vstv %s2204_s7  ;;  %s3194_s7 = sld [smem:[#allocation59_spill]] }
 0x121   :  { %v1150_v51 = vmul.f32 %v3185_v36, %v1146_v6  ;;  %v1166_v20 = vmul.f32 %v3186_v15, %v1146_v6  ;;  %v3187_v9 = vstv %s3180_s17  ;;  %v1105_v13 = vrot.slane %v1098_v40, %v1944_v7 }
 0x122   :  { %v1130_v52 = vcombine.low %v1126_v1, %v1127_v2  ;;  %v1182_v16 = vmul.f32 %v3187_v9, %v1146_v6  ;;  %v1121_v46 = vrot.slane %v1114_v12, %v1944_v7  ;;  %v3188_v47 = vmov %v3185_v36 }
 0x123   :  { %v1151_v30 = vmul.f32 %v3188_v47, %v1147_v63  ;;  %v3189_v31 = vmov %v3186_v15  ;;  %v3190_v50 = vmov %v3187_v9  ;;  %v1200_v49 = vsel %vm1076_vm5, %v1197_v35, %v2695_v42 }
 0x124   :  { %v1167_v25 = vmul.f32 %v3189_v31, %v1147_v63  ;;  %v1137_v4 = vrot.slane %v1130_v52, %v1944_v7  ;;  %v1183_v37 = vmul.f32 %v3190_v50, %v1147_v63  ;;  %v1201_v28 = vsel %vm1076_vm5, %v2695_v42, %v1197_v35 }
 0x125   :  { %v1107_v21 = vadd.f32 %v1105_v13, %v1037_v8  ;;  %v1123_v10 = vadd.f32 %v1121_v46, %v1053_v54  ;;  %v1154_v57 = vcombine.low %v1150_v51, %v1151_v30  ;;  %v1202_v22 = vmul.f32 %v2261_v3, %v1200_v49 }
 0x126   :  { %v1170_v29 = vcombine.low %v1166_v20, %v1167_v25  ;;  %v1139_v14 = vadd.f32 %v1137_v4, %v1069_v23  ;;  %v1186_v45 = vcombine.low %v1182_v16, %v1183_v37  ;;  %v1203_v44 = vmul.f32 %v1201_v28, %v2317_v5  ;;  %v1381_v5 = vpop.permute.xlu1 %1380  ;;  %v1437_v37 = vpop.permute.xlu0 %1436 }
 0x127   :  { %v1161_v34 = vrot.slane %v1154_v57, %v1944_v7  ;;  %v1259_v42 = vsel %vm1258_vm6, %v1255_v39, %v1257_v56  ;;  %v1260_v35 = vsel %vm1258_vm6, %v1257_v56, %v1255_v39  ;;  %v3191_v59 = vstv %s2215_s18  ;;  %s3203_s18 = sld [smem:[#allocation61_spill]] }
 0x128   :  { %v1177_v27 = vrot.slane %v1170_v29, %v1944_v7  ;;  %v1193_v19 = vrot.slane %v1186_v45, %v1944_v7  ;;  %v1206_v43 = vmul.f32 %v3191_v59, %v1202_v22  ;;  %v3192_v48 = vmov %v3191_v59 }
 0x129   :  { %v1207_v11 = vmul.f32 %v3192_v48, %v1203_v44  ;;  %v3193_v3 = vstv %s2221_s19  ;;  %v1163_v33 = vadd.f32 %v1161_v34, %v1107_v21  ;;  %v3196_v62 = vstv %s2223_s8  ;;  %s3201_s8 = sld [smem:[#allocation60_spill]]  ;;  %s3206_s19 = sld [smem:[#allocation62_spill]] }
 0x12a   :  { %v1222_v26 = vmul.f32 %v3193_v3, %v1202_v22  ;;  %v1179_v24 = vadd.f32 %v1177_v27, %v1123_v10  ;;  %v3195_v41 = vmov %v3193_v3  ;;  %v1238_v1 = vmul.f32 %v3196_v62, %v1202_v22  ;;  %v1439_v50 = vpop.permute.xlu1 %1438 }
 0x12b   :  { %v1223_v58 = vmul.f32 %v3195_v41, %v1203_v44  ;;  %v1195_v56 = vadd.f32 %v1193_v19, %v1139_v14  ;;  %v1210_v39 = vcombine.low %v1206_v43, %v1207_v11  ;;  %v3197_v8 = vmov %v3196_v62 }
 0x12c   :  { %v1239_v54 = vmul.f32 %v3197_v8, %v1203_v44  ;;  %v1272_v61 = vmul.f32 %v2287_v0, %v1259_v42  ;;  %v1273_v6 = vmul.f32 %v2330_v55, %v1260_v35  ;;  %v1326_v23 = vsel %vm1258_vm6, %v1323_v38, %v1325_v32 }
 0x12d   :  { %v1226_v2 = vcombine.low %v1222_v26, %v1223_v58  ;;  %v1327_v40 = vsel %vm1258_vm6, %v1325_v32, %v1323_v38  ;;  %v1217_v12 = vrot.slane %v1210_v39, %v1944_v7  ;;  %v3198_v52 = vstv %s3194_s7 }
 0x12e   :  { %v1242_v63 = vcombine.low %v1238_v1, %v1239_v54  ;;  %v1276_v36 = vmul.f32 %v3198_v52, %v1272_v61  ;;  %v3199_v51 = vstv %s2231_s0  ;;  %v3200_v9 = vmov %v3198_v52  ;;  %v1507_v54 = vpop.permute.xlu1 %1506  ;;  %s3214_s0 = sld [smem:[#allocation56_spill]] }
 0x12f   :  { %v1292_v15 = vmul.f32 %v3199_v51, %v1272_v61  ;;  %v1233_v20 = vrot.slane %v1226_v2, %v1944_v7  ;;  %v1277_v16 = vmul.f32 %v3200_v9, %v1273_v6  ;;  %v3202_v13 = vmov %v3199_v51 }
 0x130   :  { %v1293_v46 = vmul.f32 %v3202_v13, %v1273_v6  ;;  %v3204_v47 = vstv %s2240_s28  ;;  %v1219_v31 = vadd.f32 %v1217_v12, %v1163_v33  ;;  %v1249_v32 = vrot.slane %v1242_v63, %v1944_v7 }
 0x131   :  { %v1308_v30 = vmul.f32 %v3204_v47, %v1272_v61  ;;  %v3205_v38 = vmov %v3204_v47  ;;  %v1328_v4 = vmul.f32 %v2287_v0, %v1326_v23  ;;  %v1235_v49 = vadd.f32 %v1233_v20, %v1179_v24  ;;  %v1505_v61 = vpop.permute.xlu0 %1504 }
 0x132   :  { %v1309_v25 = vmul.f32 %v3205_v38, %v1273_v6  ;;  %v1280_v28 = vcombine.low %v1276_v36, %v1277_v16  ;;  %v1296_v21 = vcombine.low %v1292_v15, %v1293_v46  ;;  %v1329_v10 = vmul.f32 %v1327_v40, %v2330_v55 }
 0x133   :  { %v1251_v57 = vadd.f32 %v1249_v32, %v1195_v56  ;;  %v3207_v14 = vstv %s3201_s8  ;;  %v3208_v22 = vstv %s3203_s18  ;;  %v3211_v48 = vstv %s3206_s19 }
 0x134   :  { %v1312_v29 = vcombine.low %v1308_v30, %v1309_v25  ;;  %v1332_v45 = vmul.f32 %v3207_v14, %v1328_v4  ;;  %v1348_v44 = vmul.f32 %v3208_v22, %v1328_v4  ;;  %v1287_v34 = vrot.slane %v1280_v28, %v1944_v7 }
 0x135   :  { %v1303_v27 = vrot.slane %v1296_v21, %v1944_v7  ;;  %v3209_v42 = vmov %v3207_v14  ;;  %v3210_v19 = vmov %v3208_v22  ;;  %v1364_v11 = vmul.f32 %v3211_v48, %v1328_v4  ;;  %v1563_v14 = vpop.permute.xlu1 %1562 }
 0x136   :  { %v1333_v35 = vmul.f32 %v3209_v42, %v1329_v10  ;;  %v1349_v59 = vmul.f32 %v3210_v19, %v1329_v10  ;;  %v1319_v43 = vrot.slane %v1312_v29, %v1944_v7  ;;  %v3212_v3 = vmov %v3211_v48 }
 0x137   :  { %v1365_v26 = vmul.f32 %v3212_v3, %v1329_v10  ;;  %v1382_v33 = vsel %vm1258_vm6, %v1379_v18, %v1381_v5  ;;  %v1289_v24 = vadd.f32 %v1287_v34, %v1219_v31  ;;  %v1305_v41 = vadd.f32 %v1303_v27, %v1235_v49 }
 0x138   :  { %v1336_v58 = vcombine.low %v1332_v45, %v1333_v35  ;;  %v1352_v62 = vcombine.low %v1348_v44, %v1349_v59  ;;  %v1321_v1 = vadd.f32 %v1319_v43, %v1251_v57  ;;  %v1383_v39 = vsel %vm1258_vm6, %v1381_v5, %v1379_v18  ;;  %v1561_v45 = vpop.permute.xlu0 %1560 }
 0x139   :  { %v1368_v56 = vcombine.low %v1364_v11, %v1365_v26  ;;  %v1384_v8 = vmul.f32 %v2287_v0, %v1382_v33  ;;  %v1385_v23 = vmul.f32 %v1383_v39, %v2330_v55  ;;  %v1441_v40 = vsel %vm1440_vm7, %v1437_v37, %v1439_v50 }
 0x13a   :  { %v1343_v2 = vrot.slane %v1336_v58, %v1944_v7  ;;  %v1359_v6 = vrot.slane %v1352_v62, %v1944_v7  ;;  %v3213_v63 = vstv %s2263_s26  ;;  %v3215_v36 = vstv %s2265_s25 }
 0x13b   :  { %v1375_v12 = vrot.slane %v1368_v56, %v1944_v7  ;;  %v1388_v52 = vmul.f32 %v3213_v63, %v1384_v8  ;;  %v1404_v5 = vmul.f32 %v3215_v36, %v1384_v8  ;;  %v3216_v0 = vstv %s2273_s27 }
 0x13c   :  { %v1420_v18 = vmul.f32 %v3216_v0, %v1384_v8  ;;  %v3217_v51 = vmov %v3213_v63  ;;  %v3218_v20 = vmov %v3215_v36  ;;  %v3219_v55 = vmov %v3216_v0 }
 0x13d   :  { %v1389_v15 = vmul.f32 %v3217_v51, %v1385_v23  ;;  %v1405_v9 = vmul.f32 %v3218_v20, %v1385_v23  ;;  %v1421_v16 = vmul.f32 %v3219_v55, %v1385_v23  ;;  %v1442_v13 = vsel %vm1440_vm7, %v1439_v50, %v1437_v37 }
 0x13e   :  { %v1454_v46 = vmul.f32 %v2333_v53, %v1441_v40  ;;  %v1455_v47 = vmul.f32 %v2354_v60, %v1442_v13  ;;  %v1508_v30 = vsel %vm1440_vm7, %v1505_v61, %v1507_v54  ;;  %v1509_v31 = vsel %vm1440_vm7, %v1507_v54, %v1505_v61 }
 0x13f   :  { %v1392_v32 = vcombine.low %v1388_v52, %v1389_v15  ;;  %v1408_v38 = vcombine.low %v1404_v5, %v1405_v9  ;;  %v1424_v25 = vcombine.low %v1420_v18, %v1421_v16  ;;  %v1510_v4 = vmul.f32 %v2333_v53, %v1508_v30 }
 0x140   :  { %v3220_v49 = vstv %s3214_s0  ;;  %v3222_v21 = vstv %s2289_s10  ;;  %v3224_v27 = vstv %s2291_s15  ;;  %v1511_v48 = vmul.f32 %v1509_v31, %v2354_v60 }
 0x141   :  { %v1458_v50 = vmul.f32 %v3220_v49, %v1454_v46  ;;  %v3221_v37 = vmov %v3220_v49  ;;  %v1474_v10 = vmul.f32 %v3222_v21, %v1454_v46  ;;  %v3223_v57 = vmov %v3222_v21 }
 0x142   :  { %v1459_v28 = vmul.f32 %v3221_v37, %v1455_v47  ;;  %v1475_v29 = vmul.f32 %v3223_v57, %v1455_v47  ;;  %v1399_v22 = vrot.slane %v1392_v32, %v1944_v7  ;;  %v1415_v44 = vrot.slane %v1408_v38, %v1944_v7 }
 0x143   :  { %v1431_v34 = vrot.slane %v1424_v25, %v1944_v7  ;;  %v1490_v42 = vmul.f32 %v3224_v27, %v1454_v46  ;;  %v3225_v59 = vmov %v3224_v27  ;;  %v3226_v11 = vstv %s2303_s16 }
 0x144   :  { %v1462_v35 = vcombine.low %v1458_v50, %v1459_v28  ;;  %v1478_v19 = vcombine.low %v1474_v10, %v1475_v29  ;;  %v1491_v43 = vmul.f32 %v3225_v59, %v1455_v47  ;;  %v1514_v3 = vmul.f32 %v3226_v11, %v1510_v4 }
 0x145   :  { %v3227_v26 = vstv %s2305_s22  ;;  %v3228_v58 = vstv %s2311_s9  ;;  %v1564_v56 = vsel %vm1440_vm7, %v1561_v45, %v1563_v14  ;;  %v3230_v8 = vmov %v3226_v11  ;;  %s1868_s9 = smov [#allocation11]  }
 0x146   :  { %v1530_v33 = vmul.f32 %v3227_v26, %v1510_v4  ;;  %v1546_v62 = vmul.f32 %v3228_v58, %v1510_v4  ;;  %v1494_v39 = vcombine.low %v1490_v42, %v1491_v43  ;;  %v1515_v54 = vmul.f32 %v3230_v8, %v1511_v48  ;;  %s1630_s16 = sshll.u32 %s1868_s9, 4  ;;  %s1631_s16 = int_to_ptr.vmem [resolvable:$true] %s1630_s16 }
 0x147   :  { %v3231_v61 = vmov %v3227_v26  ;;  %v3232_v40 = vmov %v3228_v58  ;;  %v1565_v52 = vsel %vm1440_vm7, %v1563_v14, %v1561_v45  ;;  %v1566_v36 = vmul.f32 %v2333_v53, %v1564_v56  ;;  %s1821_s21 = scalar_lea.vmem %s1631_s16, 192  ;;  %p1826_p11 = scmp.lt.s32.totalorder %s1631_s16, %s1631_s16 }
 0x148   :  { %v1531_v23 = vmul.f32 %v3231_v61, %v1511_v48  ;;  %v1547_v63 = vmul.f32 %v3232_v40, %v1511_v48  ;;  %v1345_v5 = vadd.f32 %v1343_v2, %v1289_v24  ;;  %v1361_v0 = vadd.f32 %v1359_v6, %v1305_v41  ;;  %p1822_p10 = scmp.ne.s32.totalorder %s1631_s16, %s1821_s21  ;;  %p1827_p12 = scmp.lt.s32.totalorder %s1821_s21, %s1821_s21 }
 0x149   :  { %v1518_v18 = vcombine.low %v1514_v3, %v1515_v54  ;;  %v1567_v20 = vmul.f32 %v1565_v52, %v2354_v60  ;;  %v3233_v9 = vstv %s2313_s12  ;;  %v3234_v16 = vstv %s3229_s20 }
 0x14a   :  { %v1534_v51 = vcombine.low %v1530_v33, %v1531_v23  ;;  %v1550_v15 = vcombine.low %v1546_v62, %v1547_v63  ;;  %v1570_v55 = vmul.f32 %v3233_v9, %v1566_v36  ;;  %v1586_v13 = vmul.f32 %v3234_v16, %v1566_v36  ;;  %p1828_p13 = por %p1827_p12, %p1826_p11 }
 0x14b   :  { %v3235_v46 = vstv %s2346_s4  ;;  %v1377_v30 = vadd.f32 %v1375_v12, %v1321_v1  ;;  %v3236_v31 = vmov %v3233_v9  ;;  %v3237_v17 = vmov %v3234_v16 }
 0x14c   :  { %v1602_v47 = vmul.f32 %v3235_v46, %v1566_v36  ;;  %v1571_v32 = vmul.f32 %v3236_v31, %v1567_v20  ;;  %v1587_v38 = vmul.f32 %v3237_v17, %v1567_v20  ;;  %v3238_v25 = vmov %v3235_v46  ;;  %p1829_p0 = pnand %p1828_p13, %p1822_p10 }
 0x14d   :  { %v1603_v53 = vmul.f32 %v3238_v25, %v1567_v20  ;;  %v1401_v24 = vadd.f32 %v1399_v22, %v1345_v5  ;;  %v1417_v41 = vadd.f32 %v1415_v44, %v1361_v0  ;;  %v1433_v2 = vadd.f32 %v1431_v34, %v1377_v30 }
 0x14e   :  { %v1469_v6 = vrot.slane %v1462_v35, %v1944_v7  ;;  %v1485_v60 = vrot.slane %v1478_v19, %v1944_v7  ;;  %v1501_v4 = vrot.slane %v1494_v39, %v1944_v7  ;;  %v1525_v49 = vrot.slane %v1518_v18, %v1944_v7 }
 0x14f   :  { %v1541_v50 = vrot.slane %v1534_v51, %v1944_v7  ;;  %v1557_v1 = vrot.slane %v1550_v15, %v1944_v7  ;;  %v1574_v28 = vcombine.low %v1570_v55, %v1571_v32  ;;  %v1590_v21 = vcombine.low %v1586_v13, %v1587_v38 }
 0x150   :  { %v1471_v12 = vadd.f32 %v1469_v6, %v1401_v24  ;;  %v1487_v37 = vadd.f32 %v1485_v60, %v1417_v41  ;;  %v1503_v10 = vadd.f32 %v1501_v4, %v1433_v2  ;;  %v1606_v57 = vcombine.low %v1602_v47, %v1603_v53 }
 0x151   :  { %v1581_v45 = vrot.slane %v1574_v28, %v1944_v7  ;;  %v1597_v22 = vrot.slane %v1590_v21, %v1944_v7 }
 0x152   :  { %v1527_v29 = vadd.f32 %v1525_v49, %v1471_v12  ;;  %v1543_v14 = vadd.f32 %v1541_v50, %v1487_v37  ;;  %v1559_v44 = vadd.f32 %v1557_v1, %v1503_v10  ;;  %v1613_v34 = vrot.slane %v1606_v57, %v1944_v7 }
 0x154   :  { %v1583_v27 = vadd.f32 %v1581_v45, %v1527_v29  ;;  %v1599_v42 = vadd.f32 %v1597_v22, %v1543_v14  ;;  %v1615_v35 = vadd.f32 %v1613_v34, %v1559_v44 }
 0x156   :  { %1618 = vst [vmem:[#allocation11] sm:$0xf] %v1583_v27  ;;  %1621 = vst [vmem:[#allocation11 + $0x4] sm:$0xf] %v1599_v42 }
 0x157   :  { %1624 = vst [vmem:[#allocation11 + $0x8] sm:$0xf] %v1615_v35 }
 0x158   :  { %1832 = shalt.err (!%p1829_p0)
}
 0x159   :  { %s3239_s25 = sld [smem:[#allocation63_spill]] }
 0x15f   :  { %s1833_s2 = scalar_lea.hbm %s3239_s25, 192 }
 0x160   :  { %p1834_p1 = scmp.ne.s32.totalorder %s3239_s25, %s1833_s2  ;;  %p1837_p2 = scmp.lt.u32.totalorder %s1833_s2, %s3239_s25 }
 0x162   :  { %p1839_p3 = pnand %p1837_p2, %p1834_p1 }
 0x164   :  { %1842 = shalt.err (!%p1839_p3)
}
 0x165   :  { %s3240_s12 = smov 4   ;;  %s3241_s4 = smov 64  }
 0x166   :  { %1636 = dma.vmem_to_hbm [thread:$0]  %s1631_s16, 192, %s3239_s25, [#allocation4], %s3241_s4, %s3241_s4, %s3240_s12  }
 0x167   :  { %1851 = dma.done.wait [#allocation4], 192  }
 0x168   :  { %1852 = vsyncadd [#allocation4], 4294967104 }
 0x169   :  { %1640 = vsyncpa [#allocation3], 1 }
 0x16a   :  { %1641 = vsyncpa [#allocation10], 1 }
 0x16b   :  { %1642 = vsyncpa [#allocation4], 1 }
 0x16c   :  { %1643 = vsyncpa [#allocation5], 1 }
 0x16d   :  { %1644 = vsyncpa [#allocation6], 1 }

</bundles_post_ra>
